<compile_context>
chip_gen: v7x
topology: tpu7x:2x2x1
jax: 0.10.0
libtpu: 0.0.40
codegen_flags: <defaults>
</compile_context>

<pallas_src>
import functools

import jax
import jax.numpy as jnp
from jax import lax
from jax.experimental import pallas as pl
from jax.experimental.pallas import tpu as pltpu


_PARAM_ORDER = ("ln1_w", "ln1_b", "wqkv", "wo", "bo",
                "ln2_w", "ln2_b", "w1", "b1", "w2", "b2")
# Matmul weights are carried as bf16 (MXU operands); LN scales/biases and the
# small post-matmul biases stay f32.
_BF16_PARAMS = frozenset({"wqkv", "wo", "w1", "w2"})


def _clip_layer_kernel(x_ref, ln1w_ref, ln1b_ref, wqkv_ref, wo_ref, bo_ref,
                       ln2w_ref, ln2b_ref, w1_ref, b1_ref, w2_ref, b2_ref,
                       o_ref, q_scr, k_scr, v_scr, ctx_scr,
                       *, n_head, d_head, eps=1e-5):
    x = x_ref[0].astype(jnp.float32)                     # (S, D) residual stream, f32
    S, D = x.shape

    # ---------- Pre-LayerNorm 1 (f32) ----------
    mu = jnp.mean(x, axis=-1, keepdims=True)
    var = jnp.mean(jnp.square(x - mu), axis=-1, keepdims=True)
    xn = (x - mu) * lax.rsqrt(var + eps)
    xn = xn * ln1w_ref[...] + ln1b_ref[...]

    # ---------- Causal self-attention (no in-proj bias; out-proj has bias) ----------
    # QKV projection: bf16 operands -> f32 accumulation on the MXU.
    qkv = jnp.dot(xn.astype(jnp.bfloat16), wqkv_ref[...],
                  preferred_element_type=jnp.float32)    # (S, 3D) f32
    scale = d_head ** -0.5

    # Stage per-head q/k/v into bf16 VMEM scratch (q pre-scaled once).  This
    # bounds the live range of the f32 qkv value; the attention loop below only
    # touches scr[h].
    for h in range(n_head):
        lo = h * d_head
        q_scr[h] = (qkv[:, lo:lo + d_head] * scale).astype(jnp.bfloat16)
        k_scr[h] = qkv[:, D + lo:D + lo + d_head].astype(jnp.bfloat16)
        v_scr[h] = qkv[:, 2 * D + lo:2 * D + lo + d_head].astype(jnp.bfloat16)

    # Additive causal mask bias, large finite negative (NaN-safe even for a
    # hypothetical fully-masked row).
    row = lax.broadcasted_iota(jnp.int32, (S, S), 0)
    col = lax.broadcasted_iota(jnp.int32, (S, S), 1)
    mask_bias = jnp.where(col > row, jnp.float32(-1e30), jnp.float32(0.0))

    # Per head: scores -> softmax -> (P @ V) written into the bf16 (S, D) context
    # scratch at a static lane offset.  Only one (S, S) score slab is live per
    # iteration and no concatenate / relayout is emitted.
    # TODO(synk): for 12-16-head production shapes, switch this to
    # lax.fori_loop(..., unroll=2) over heads (scratch reads already use scr[h]).
    for h in range(n_head):
        lo = h * d_head
        qh = q_scr[h]                                    # (S, dh) bf16
        kh = k_scr[h]
        vh = v_scr[h]
        # Contract on the feature dim directly: no kh.T value transpose (XLU-free).
        s = lax.dot_general(qh, kh,
                            dimension_numbers=(((1,), (1,)), ((), ())),
                            preferred_element_type=jnp.float32)          # (S, S) f32
        s = s + mask_bias
        m = jnp.max(s, axis=-1, keepdims=True)
        e = jnp.exp(s - m)
        # TODO(synk): on v6e/v7x (bf16 EUP) compute exp in bf16; keep f32 on v5e.
        p = e * pl.reciprocal(jnp.sum(e, axis=-1, keepdims=True), approx=True)
        oh = jnp.dot(p.astype(jnp.bfloat16), vh,
                     preferred_element_type=jnp.float32)                 # (S, dh) f32
        ctx_scr[:, lo:lo + d_head] = oh.astype(jnp.bfloat16)

    # Single fused out-projection: full K = D contraction depth on the MXU.
    attn = jnp.dot(ctx_scr[...], wo_ref[...],
                   preferred_element_type=jnp.float32) + bo_ref[...]     # (S, D) f32
    # TODO(synk): for B==1 / long-sequence vision CLIP on v7x, add a second
    # "parallel" grid axis over query tiles (flash-style online softmax) so both
    # TensorCores have work and the live score slab shrinks to (Tq, S).

    x1 = x + attn                                        # residual 1 (f32)

    # ---------- Pre-LayerNorm 2 + QuickGELU MLP ----------
    mu2 = jnp.mean(x1, axis=-1, keepdims=True)
    var2 = jnp.mean(jnp.square(x1 - mu2), axis=-1, keepdims=True)
    xn2 = (x1 - mu2) * lax.rsqrt(var2 + eps)
    xn2 = xn2 * ln2w_ref[...] + ln2b_ref[...]

    h1 = jnp.dot(xn2.astype(jnp.bfloat16), w1_ref[...],
                 preferred_element_type=jnp.float32) + b1_ref[...]       # (S, 4D) f32
    h1 = h1 * jax.nn.sigmoid(1.702 * h1)                 # QuickGELU (f32, VPU+EUP)
    # TODO(synk): for very large S on v7x (64 MiB VMEM), tile the MLP over S row
    # tiles or stream w1/w2 in K chunks via pltpu.emit_pipeline.
    h2 = jnp.dot(h1.astype(jnp.bfloat16), w2_ref[...],
                 preferred_element_type=jnp.float32) + b2_ref[...]       # (S, D) f32

    o_ref[0] = (x1 + h2).astype(o_ref.dtype)             # residual 2


def _weight_pipeline_mode():
    """Return pl.Buffered(1) if this Pallas build supports BlockSpec(pipeline_mode=...)
    (constant index_map => double-buffering resident weights is pure waste);
    otherwise None.  Narrow construction-time probe only — real lowering / VMEM
    errors are NOT swallowed."""
    try:
        mode = pl.Buffered(1)
        pl.BlockSpec((8, 128), lambda i: (0, 0), pipeline_mode=mode)
        return mode
    except (AttributeError, TypeError, ValueError):
        return None


def _build_clip_layer_call(x, param_arrays, n_head):
    B, S, D = x.shape
    d_head = D // n_head
    kernel = functools.partial(_clip_layer_kernel, n_head=n_head, d_head=d_head)

    pipeline_mode = _weight_pipeline_mode()

    def weight_spec(p):
        nd = p.ndim
        if pipeline_mode is None:
            return pl.BlockSpec(p.shape, lambda b, nd=nd: (0,) * nd)
        return pl.BlockSpec(p.shape, lambda b, nd=nd: (0,) * nd,
                            pipeline_mode=pipeline_mode)

    scratch_shapes = [
        pltpu.VMEM((n_head, S, d_head), jnp.bfloat16),   # q (pre-scaled)
        pltpu.VMEM((n_head, S, d_head), jnp.bfloat16),   # k
        pltpu.VMEM((n_head, S, d_head), jnp.bfloat16),   # v
        pltpu.VMEM((S, D), jnp.bfloat16),                # per-head attention context
    ]

    grid_spec = pltpu.PrefetchScalarGridSpec(
        num_scalar_prefetch=0,
        grid=(B,),
        in_specs=[pl.BlockSpec((1, S, D), lambda b: (b, 0, 0))] +
                 [weight_spec(p) for p in param_arrays],
        out_specs=pl.BlockSpec((1, S, D), lambda b: (b, 0, 0)),
        scratch_shapes=scratch_shapes,
    )

    # ---- Scoped-VMEM budget (hardware-aware, explicit working-set accounting) ----
    F32, BF16 = 4, 2
    weight_bytes = sum(p.size * p.dtype.itemsize for p in param_arrays)
    if pipeline_mode is None:
        weight_bytes *= 2                                 # default double-buffered
    io_bytes = 2 * 2 * S * D * x.dtype.itemsize           # x + out, double-buffered
    dh_pad = -(-d_head // 128) * 128                       # lane padding of head slabs
    scratch_bytes = (3 * n_head * S * dh_pad + S * max(D, 128)) * BF16
    act_bytes = (6 * S * D * F32                           # residual stream / LN / attn temps
                 + S * 3 * D * F32                         # f32 qkv accumulation
                 + 4 * S * S * F32                         # in-flight score / exp slabs
                 + S * 4 * D * (F32 + BF16)                # h1 + its bf16 cast
                 + 3 * S * D * BF16                        # bf16 casts of xn / xn2 / etc.
                 + S * S * BF16)                           # bf16 p cast
    requested = int(1.25 * (weight_bytes + io_bytes + scratch_bytes + act_bytes))

    try:
        vmem_cap = int(pltpu.get_tpu_info().vmem_capacity_bytes)
    except Exception:                                      # capability probe only
        vmem_cap = 64 * 1024 * 1024                        # conservative: legal everywhere
    vmem_limit = max(32 * 1024 * 1024, min(requested, int(0.8 * vmem_cap)))

    return pl.pallas_call(
        kernel,
        out_shape=jax.ShapeDtypeStruct((B, S, D), x.dtype),
        grid_spec=grid_spec,
        compiler_params=pltpu.CompilerParams(
            dimension_semantics=("parallel",),
            vmem_limit_bytes=vmem_limit),
    )


def clip_layer(x, params, n_head):
    """Pallas forward for CLIPLayer.  Matmul weights are cast to bf16 here (MXU
    operands); accumulation and all elementwise math stay f32.  `x` may be f32
    or bf16; the output matches x.dtype (bf16 I/O halves per-step HBM traffic)."""
    param_arrays = [
        params[k].astype(jnp.bfloat16) if k in _BF16_PARAMS
        else params[k].astype(jnp.float32)
        for k in _PARAM_ORDER
    ]
    # TODO(synk): for CLIP-typical S values that are not multiples of 8 (77, 257),
    # pad S here (and mask padded rows) so the (S,S)/(S,4D) ops run full-width.
    call = _build_clip_layer_call(x, param_arrays, n_head)
    return call(x, *param_arrays)


def clip_layer_reference(x, params, n_head, eps=1e-5):
    """Plain-JAX reference mirroring the PyTorch forward.  Uses the same bf16
    weight quantization as the kernel so the comparison isolates kernel structure."""
    B, S, D = x.shape
    d_head = D // n_head

    def q16(w):
        return w.astype(jnp.bfloat16).astype(jnp.float32)

    def ln(v, w, b):
        mu = jnp.mean(v, axis=-1, keepdims=True)
        var = jnp.mean(jnp.square(v - mu), axis=-1, keepdims=True)
        return (v - mu) / jnp.sqrt(var + eps) * w + b

    residue = x
    h = ln(x, params["ln1_w"], params["ln1_b"])
    qkv = h @ q16(params["wqkv"])
    q, k, v = jnp.split(qkv, 3, axis=-1)
    q = q.reshape(B, S, n_head, d_head).transpose(0, 2, 1, 3)
    k = k.reshape(B, S, n_head, d_head).transpose(0, 2, 1, 3)
    v = v.reshape(B, S, n_head, d_head).transpose(0, 2, 1, 3)
    scores = jnp.einsum("bhqd,bhkd->bhqk", q, k)
    mask = jnp.triu(jnp.ones((S, S), bool), k=1)
    scores = jnp.where(mask, -jnp.inf, scores) / jnp.sqrt(jnp.float32(d_head))
    w = jax.nn.softmax(scores, axis=-1)
    o = jnp.einsum("bhqk,bhkd->bhqd", w, v).transpose(0, 2, 1, 3).reshape(B, S, D)
    o = o @ q16(params["wo"]) + params["bo"]
    x = o + residue
    residue = x
    h = ln(x, params["ln2_w"], params["ln2_b"])
    h = h @ q16(params["w1"]) + params["b1"]
    h = h * jax.nn.sigmoid(1.702 * h)
    h = h @ q16(params["w2"]) + params["b2"]
    return h + residue


if __name__ == "__main__":
    # Lane-dense demo shapes: D multiple of 128, S multiple of 8, d_head = 64
    # (real CLIP head size).  Small enough to run instantly.
    B, S, D, H = 2, 16, 128, 2
    key = jax.random.PRNGKey(0)
    ks = jax.random.split(key, 12)

    def randp(k, shape, scale=0.05):
        return scale * jax.random.normal(k, shape, jnp.float32)

    x = jax.random.normal(ks[0], (B, S, D), jnp.float32)

    # Linear weights are stored pre-transposed ((in, out)) so the kernel computes
    # y = x @ W + b (PyTorch nn.Linear stores (out, in)).
    params = {
        "ln1_w": jnp.ones((1, D), jnp.float32) + randp(ks[1], (1, D)),
        "ln1_b": randp(ks[2], (1, D)),
        "wqkv":  randp(ks[3], (D, 3 * D)),      # attention in_proj (bias=False)
        "wo":    randp(ks[4], (D, D)),          # attention out_proj weight
        "bo":    randp(ks[5], (1, D)),          # attention out_proj bias
        "ln2_w": jnp.ones((1, D), jnp.float32) + randp(ks[6], (1, D)),
        "ln2_b": randp(ks[7], (1, D)),
        "w1":    randp(ks[8], (D, 4 * D)),      # linear_1
        "b1":    randp(ks[9], (1, 4 * D)),
        "w2":    randp(ks[10], (4 * D, D)),     # linear_2
        "b2":    randp(ks[11], (1, D)),
    }

    out = jax.block_until_ready(clip_layer(x, params, n_head=H))
    ref = jax.block_until_ready(clip_layer_reference(x, params, n_head=H))

    assert out.shape == (B, S, D)
    max_err = float(jnp.max(jnp.abs(out - ref)))
    # bf16 matmul operands + EUP approx reciprocal -> looser tolerance than pure f32.
    assert jnp.allclose(out, ref, atol=3e-2, rtol=3e-2), \
        f"mismatch vs reference (max abs err {max_err})"

    print("KERNEL_OK")
</pallas_src>

<mosaic_0001>
module attributes {stable_mosaic.version = 11 : i64} {
  func.func @_clip_layer_kernel(%arg0: i32, %arg1: memref<1x16x128xf32, #tpu.memory_space<vmem>>, %arg2: memref<1x128xf32, #tpu.memory_space<vmem>>, %arg3: memref<1x128xf32, #tpu.memory_space<vmem>>, %arg4: memref<128x384xbf16, #tpu.memory_space<vmem>>, %arg5: memref<128x128xbf16, #tpu.memory_space<vmem>>, %arg6: memref<1x128xf32, #tpu.memory_space<vmem>>, %arg7: memref<1x128xf32, #tpu.memory_space<vmem>>, %arg8: memref<1x128xf32, #tpu.memory_space<vmem>>, %arg9: memref<128x512xbf16, #tpu.memory_space<vmem>>, %arg10: memref<1x512xf32, #tpu.memory_space<vmem>>, %arg11: memref<512x128xbf16, #tpu.memory_space<vmem>>, %arg12: memref<1x128xf32, #tpu.memory_space<vmem>>, %arg13: memref<1x16x128xf32, #tpu.memory_space<vmem>>, %arg14: memref<2x16x64xbf16, #tpu.memory_space<vmem>>, %arg15: memref<2x16x64xbf16, #tpu.memory_space<vmem>>, %arg16: memref<2x16x64xbf16, #tpu.memory_space<vmem>>, %arg17: memref<16x128xbf16, #tpu.memory_space<vmem>>) attributes {dimension_semantics = [#tpu.dimension_semantics<parallel>], iteration_bounds = array<i64: 2>, scalar_prefetch = 0 : i64, scratch_operands = 4 : i64, tpu.core_type = #tpu.core_type<tc>, window_params = [{transform_indices = @transform_0, window_bounds = array<i64: 1, 16, 128>}, {pipeline_mode = #tpu.pipeline_mode<synchronous>, transform_indices = @transform_1, window_bounds = array<i64: 1, 128>}, {pipeline_mode = #tpu.pipeline_mode<synchronous>, transform_indices = @transform_2, window_bounds = array<i64: 1, 128>}, {pipeline_mode = #tpu.pipeline_mode<synchronous>, transform_indices = @transform_3, window_bounds = array<i64: 128, 384>}, {pipeline_mode = #tpu.pipeline_mode<synchronous>, transform_indices = @transform_4, window_bounds = array<i64: 128, 128>}, {pipeline_mode = #tpu.pipeline_mode<synchronous>, transform_indices = @transform_5, window_bounds = array<i64: 1, 128>}, {pipeline_mode = #tpu.pipeline_mode<synchronous>, transform_indices = @transform_6, window_bounds = array<i64: 1, 128>}, {pipeline_mode = #tpu.pipeline_mode<synchronous>, transform_indices = @transform_7, window_bounds = array<i64: 1, 128>}, {pipeline_mode = #tpu.pipeline_mode<synchronous>, transform_indices = @transform_8, window_bounds = array<i64: 128, 512>}, {pipeline_mode = #tpu.pipeline_mode<synchronous>, transform_indices = @transform_9, window_bounds = array<i64: 1, 512>}, {pipeline_mode = #tpu.pipeline_mode<synchronous>, transform_indices = @transform_10, window_bounds = array<i64: 512, 128>}, {pipeline_mode = #tpu.pipeline_mode<synchronous>, transform_indices = @transform_11, window_bounds = array<i64: 1, 128>}, {transform_indices = @transform_12, window_bounds = array<i64: 1, 16, 128>}]} {
    %c0 = arith.constant 0 : index
    %c0_0 = arith.constant 0 : index
    %c0_1 = arith.constant 0 : index
    %0 = vector.load %arg1[%c0, %c0_0, %c0_1] : memref<1x16x128xf32, #tpu.memory_space<vmem>>, vector<1x16x128xf32>
    %1 = vector.shape_cast %0 : vector<1x16x128xf32> to vector<16x128xf32>
    %cst = arith.constant dense<0.000000e+00> : vector<16xf32>
    %2 = vector.multi_reduction <add>, %1, %cst [1] : vector<16x128xf32> to vector<16xf32>
    %3 = vector.shape_cast %2 : vector<16xf32> to vector<16x1xf32>
    %cst_2 = arith.constant 1.280000e+02 : f32
    %4 = vector.broadcast %cst_2 : f32 to vector<16x1xf32>
    %5 = arith.divf %3, %4 : vector<16x1xf32>
    %6 = vector.broadcast %5 : vector<16x1xf32> to vector<16x128xf32>
    %7 = arith.subf %1, %6 : vector<16x128xf32>
    %8 = arith.mulf %7, %7 : vector<16x128xf32>
    %cst_3 = arith.constant dense<0.000000e+00> : vector<16xf32>
    %9 = vector.multi_reduction <add>, %8, %cst_3 [1] : vector<16x128xf32> to vector<16xf32>
    %10 = vector.shape_cast %9 : vector<16xf32> to vector<16x1xf32>
    %cst_4 = arith.constant 1.280000e+02 : f32
    %11 = vector.broadcast %cst_4 : f32 to vector<16x1xf32>
    %12 = arith.divf %10, %11 : vector<16x1xf32>
    %13 = vector.broadcast %5 : vector<16x1xf32> to vector<16x128xf32>
    %14 = arith.subf %1, %13 : vector<16x128xf32>
    %cst_5 = arith.constant 9.99999974E-6 : f32
    %15 = vector.broadcast %cst_5 : f32 to vector<16x1xf32>
    %16 = arith.addf %12, %15 : vector<16x1xf32>
    %17 = math.rsqrt %16 : vector<16x1xf32>
    %18 = vector.broadcast %17 : vector<16x1xf32> to vector<16x128xf32>
    %19 = arith.mulf %14, %18 : vector<16x128xf32>
    %c0_6 = arith.constant 0 : index
    %c0_7 = arith.constant 0 : index
    %20 = vector.load %arg2[%c0_6, %c0_7] : memref<1x128xf32, #tpu.memory_space<vmem>>, vector<1x128xf32>
    %21 = vector.broadcast %20 : vector<1x128xf32> to vector<16x128xf32>
    %22 = arith.mulf %19, %21 : vector<16x128xf32>
    %c0_8 = arith.constant 0 : index
    %c0_9 = arith.constant 0 : index
    %23 = vector.load %arg3[%c0_8, %c0_9] : memref<1x128xf32, #tpu.memory_space<vmem>>, vector<1x128xf32>
    %24 = vector.broadcast %23 : vector<1x128xf32> to vector<16x128xf32>
    %25 = arith.addf %22, %24 : vector<16x128xf32>
    %26 = arith.truncf %25 : vector<16x128xf32> to vector<16x128xbf16>
    %c0_10 = arith.constant 0 : index
    %c0_11 = arith.constant 0 : index
    %27 = vector.load %arg4[%c0_10, %c0_11] : memref<128x384xbf16, #tpu.memory_space<vmem>>, vector<128x384xbf16>
    %cst_12 = arith.constant dense<0.000000e+00> : vector<16x384xf32>
    %28 = tpu.matmul %26, %27, %cst_12 {dimension_numbers = #tpu.dot_dimension_numbers<[1], [0], [0], [1], [0, 0, 1, 1], [], []>} : vector<16x128xbf16>, vector<128x384xbf16>, vector<16x384xf32> -> vector<16x384xf32>
    %29 = vector.extract_strided_slice %28 {offsets = [0, 0], sizes = [16, 64], strides = [1, 1]} : vector<16x384xf32> to vector<16x64xf32>
    %cst_13 = arith.constant 1.250000e-01 : f32
    %30 = vector.broadcast %cst_13 : f32 to vector<16x64xf32>
    %31 = arith.mulf %29, %30 : vector<16x64xf32>
    %32 = arith.truncf %31 : vector<16x64xf32> to vector<16x64xbf16>
    %c0_14 = arith.constant 0 : index
    %c0_15 = arith.constant 0 : index
    %c0_16 = arith.constant 0 : index
    %33 = vector.load %arg14[%c0_14, %c0_15, %c0_16] : memref<2x16x64xbf16, #tpu.memory_space<vmem>>, vector<1x16x64xbf16>
    %34 = vector.shape_cast %33 : vector<1x16x64xbf16> to vector<16x64xbf16>
    %35 = vector.shape_cast %32 : vector<16x64xbf16> to vector<1x16x64xbf16>
    tpu.vector_store %arg14[%c0_14, %c0_15, %c0_16], %35 {strides = array<i32>} : memref<2x16x64xbf16, #tpu.memory_space<vmem>>, vector<1x16x64xbf16>,
    %36 = vector.extract_strided_slice %28 {offsets = [0, 128], sizes = [16, 64], strides = [1, 1]} : vector<16x384xf32> to vector<16x64xf32>
    %37 = arith.truncf %36 : vector<16x64xf32> to vector<16x64xbf16>
    %c0_17 = arith.constant 0 : index
    %c0_18 = arith.constant 0 : index
    %c0_19 = arith.constant 0 : index
    %38 = vector.load %arg15[%c0_17, %c0_18, %c0_19] : memref<2x16x64xbf16, #tpu.memory_space<vmem>>, vector<1x16x64xbf16>
    %39 = vector.shape_cast %38 : vector<1x16x64xbf16> to vector<16x64xbf16>
    %40 = vector.shape_cast %37 : vector<16x64xbf16> to vector<1x16x64xbf16>
    tpu.vector_store %arg15[%c0_17, %c0_18, %c0_19], %40 {strides = array<i32>} : memref<2x16x64xbf16, #tpu.memory_space<vmem>>, vector<1x16x64xbf16>,
    %41 = vector.extract_strided_slice %28 {offsets = [0, 256], sizes = [16, 64], strides = [1, 1]} : vector<16x384xf32> to vector<16x64xf32>
    %42 = arith.truncf %41 : vector<16x64xf32> to vector<16x64xbf16>
    %c0_20 = arith.constant 0 : index
    %c0_21 = arith.constant 0 : index
    %c0_22 = arith.constant 0 : index
    %43 = vector.load %arg16[%c0_20, %c0_21, %c0_22] : memref<2x16x64xbf16, #tpu.memory_space<vmem>>, vector<1x16x64xbf16>
    %44 = vector.shape_cast %43 : vector<1x16x64xbf16> to vector<16x64xbf16>
    %45 = vector.shape_cast %42 : vector<16x64xbf16> to vector<1x16x64xbf16>
    tpu.vector_store %arg16[%c0_20, %c0_21, %c0_22], %45 {strides = array<i32>} : memref<2x16x64xbf16, #tpu.memory_space<vmem>>, vector<1x16x64xbf16>,
    %46 = vector.extract_strided_slice %28 {offsets = [0, 64], sizes = [16, 64], strides = [1, 1]} : vector<16x384xf32> to vector<16x64xf32>
    %cst_23 = arith.constant 1.250000e-01 : f32
    %47 = vector.broadcast %cst_23 : f32 to vector<16x64xf32>
    %48 = arith.mulf %46, %47 : vector<16x64xf32>
    %49 = arith.truncf %48 : vector<16x64xf32> to vector<16x64xbf16>
    %c1 = arith.constant 1 : index
    %c0_24 = arith.constant 0 : index
    %c0_25 = arith.constant 0 : index
    %50 = vector.load %arg14[%c1, %c0_24, %c0_25] : memref<2x16x64xbf16, #tpu.memory_space<vmem>>, vector<1x16x64xbf16>
    %51 = vector.shape_cast %50 : vector<1x16x64xbf16> to vector<16x64xbf16>
    %52 = vector.shape_cast %49 : vector<16x64xbf16> to vector<1x16x64xbf16>
    tpu.vector_store %arg14[%c1, %c0_24, %c0_25], %52 {strides = array<i32>} : memref<2x16x64xbf16, #tpu.memory_space<vmem>>, vector<1x16x64xbf16>,
    %53 = vector.extract_strided_slice %28 {offsets = [0, 192], sizes = [16, 64], strides = [1, 1]} : vector<16x384xf32> to vector<16x64xf32>
    %54 = arith.truncf %53 : vector<16x64xf32> to vector<16x64xbf16>
    %c1_26 = arith.constant 1 : index
    %c0_27 = arith.constant 0 : index
    %c0_28 = arith.constant 0 : index
    %55 = vector.load %arg15[%c1_26, %c0_27, %c0_28] : memref<2x16x64xbf16, #tpu.memory_space<vmem>>, vector<1x16x64xbf16>
    %56 = vector.shape_cast %55 : vector<1x16x64xbf16> to vector<16x64xbf16>
    %57 = vector.shape_cast %54 : vector<16x64xbf16> to vector<1x16x64xbf16>
    tpu.vector_store %arg15[%c1_26, %c0_27, %c0_28], %57 {strides = array<i32>} : memref<2x16x64xbf16, #tpu.memory_space<vmem>>, vector<1x16x64xbf16>,
    %58 = vector.extract_strided_slice %28 {offsets = [0, 320], sizes = [16, 64], strides = [1, 1]} : vector<16x384xf32> to vector<16x64xf32>
    %59 = arith.truncf %58 : vector<16x64xf32> to vector<16x64xbf16>
    %c1_29 = arith.constant 1 : index
    %c0_30 = arith.constant 0 : index
    %c0_31 = arith.constant 0 : index
    %60 = vector.load %arg16[%c1_29, %c0_30, %c0_31] : memref<2x16x64xbf16, #tpu.memory_space<vmem>>, vector<1x16x64xbf16>
    %61 = vector.shape_cast %60 : vector<1x16x64xbf16> to vector<16x64xbf16>
    %62 = vector.shape_cast %59 : vector<16x64xbf16> to vector<1x16x64xbf16>
    tpu.vector_store %arg16[%c1_29, %c0_30, %c0_31], %62 {strides = array<i32>} : memref<2x16x64xbf16, #tpu.memory_space<vmem>>, vector<1x16x64xbf16>,
    %63 = tpu.iota {dimensions = array<i32: 0>} : vector<16x16xi32>
    %64 = tpu.iota {dimensions = array<i32: 1>} : vector<16x16xi32>
    %65 = arith.cmpi sgt, %64, %63 : vector<16x16xi32>
    %cst_32 = arith.constant -1.000000e+30 : f32
    %cst_33 = arith.constant 0.000000e+00 : f32
    %66 = vector.broadcast %cst_32 : f32 to vector<16x16xf32>
    %67 = vector.broadcast %cst_33 : f32 to vector<16x16xf32>
    %68 = arith.select %65, %66, %67 : vector<16x16xi1>, vector<16x16xf32>
    %c0_34 = arith.constant 0 : index
    %c0_35 = arith.constant 0 : index
    %c0_36 = arith.constant 0 : index
    %69 = vector.load %arg14[%c0_34, %c0_35, %c0_36] : memref<2x16x64xbf16, #tpu.memory_space<vmem>>, vector<1x16x64xbf16>
    %70 = vector.shape_cast %69 : vector<1x16x64xbf16> to vector<16x64xbf16>
    %c0_37 = arith.constant 0 : index
    %c0_38 = arith.constant 0 : index
    %c0_39 = arith.constant 0 : index
    %71 = vector.load %arg15[%c0_37, %c0_38, %c0_39] : memref<2x16x64xbf16, #tpu.memory_space<vmem>>, vector<1x16x64xbf16>
    %72 = vector.shape_cast %71 : vector<1x16x64xbf16> to vector<16x64xbf16>
    %c0_40 = arith.constant 0 : index
    %c0_41 = arith.constant 0 : index
    %c0_42 = arith.constant 0 : index
    %73 = vector.load %arg16[%c0_40, %c0_41, %c0_42] : memref<2x16x64xbf16, #tpu.memory_space<vmem>>, vector<1x16x64xbf16>
    %74 = vector.shape_cast %73 : vector<1x16x64xbf16> to vector<16x64xbf16>
    %cst_43 = arith.constant dense<0.000000e+00> : vector<16x16xf32>
    %75 = tpu.matmul %70, %72, %cst_43 {dimension_numbers = #tpu.dot_dimension_numbers<[1], [1], [0], [0], [0, 0, 1, 0], [], []>} : vector<16x64xbf16>, vector<16x64xbf16>, vector<16x16xf32> -> vector<16x16xf32>
    %76 = arith.addf %75, %68 : vector<16x16xf32>
    %cst_44 = arith.constant dense<0xFF800000> : vector<16xf32>
    %77 = vector.multi_reduction <maximumf>, %76, %cst_44 [1] : vector<16x16xf32> to vector<16xf32>
    %78 = vector.shape_cast %77 : vector<16xf32> to vector<16x1xf32>
    %79 = vector.broadcast %78 : vector<16x1xf32> to vector<16x16xf32>
    %80 = arith.subf %76, %79 : vector<16x16xf32>
    %81 = math.exp %80 : vector<16x16xf32>
    %cst_45 = arith.constant dense<0.000000e+00> : vector<16xf32>
    %82 = vector.multi_reduction <add>, %81, %cst_45 [1] : vector<16x16xf32> to vector<16xf32>
    %83 = vector.shape_cast %82 : vector<16xf32> to vector<16x1xf32>
    %84 = tpu.reciprocal %83 {approx = true} : vector<16x1xf32> -> vector<16x1xf32>
    %85 = vector.broadcast %84 : vector<16x1xf32> to vector<16x16xf32>
    %86 = arith.mulf %81, %85 : vector<16x16xf32>
    %87 = arith.truncf %86 : vector<16x16xf32> to vector<16x16xbf16>
    %cst_46 = arith.constant dense<0.000000e+00> : vector<16x64xf32>
    %88 = tpu.matmul %87, %74, %cst_46 {dimension_numbers = #tpu.dot_dimension_numbers<[1], [0], [0], [1], [0, 0, 1, 1], [], []>} : vector<16x16xbf16>, vector<16x64xbf16>, vector<16x64xf32> -> vector<16x64xf32>
    %89 = arith.truncf %88 : vector<16x64xf32> to vector<16x64xbf16>
    %c0_47 = arith.constant 0 : index
    %c0_48 = arith.constant 0 : index
    %90 = vector.load %arg17[%c0_47, %c0_48] : memref<16x128xbf16, #tpu.memory_space<vmem>>, vector<16x64xbf16>
    tpu.vector_store %arg17[%c0_47, %c0_48], %89 {strides = array<i32>} : memref<16x128xbf16, #tpu.memory_space<vmem>>, vector<16x64xbf16>,
    %c1_49 = arith.constant 1 : index
    %c0_50 = arith.constant 0 : index
    %c0_51 = arith.constant 0 : index
    %91 = vector.load %arg14[%c1_49, %c0_50, %c0_51] : memref<2x16x64xbf16, #tpu.memory_space<vmem>>, vector<1x16x64xbf16>
    %92 = vector.shape_cast %91 : vector<1x16x64xbf16> to vector<16x64xbf16>
    %c1_52 = arith.constant 1 : index
    %c0_53 = arith.constant 0 : index
    %c0_54 = arith.constant 0 : index
    %93 = vector.load %arg15[%c1_52, %c0_53, %c0_54] : memref<2x16x64xbf16, #tpu.memory_space<vmem>>, vector<1x16x64xbf16>
    %94 = vector.shape_cast %93 : vector<1x16x64xbf16> to vector<16x64xbf16>
    %c1_55 = arith.constant 1 : index
    %c0_56 = arith.constant 0 : index
    %c0_57 = arith.constant 0 : index
    %95 = vector.load %arg16[%c1_55, %c0_56, %c0_57] : memref<2x16x64xbf16, #tpu.memory_space<vmem>>, vector<1x16x64xbf16>
    %96 = vector.shape_cast %95 : vector<1x16x64xbf16> to vector<16x64xbf16>
    %cst_58 = arith.constant dense<0.000000e+00> : vector<16x16xf32>
    %97 = tpu.matmul %92, %94, %cst_58 {dimension_numbers = #tpu.dot_dimension_numbers<[1], [1], [0], [0], [0, 0, 1, 0], [], []>} : vector<16x64xbf16>, vector<16x64xbf16>, vector<16x16xf32> -> vector<16x16xf32>
    %98 = arith.addf %97, %68 : vector<16x16xf32>
    %cst_59 = arith.constant dense<0xFF800000> : vector<16xf32>
    %99 = vector.multi_reduction <maximumf>, %98, %cst_59 [1] : vector<16x16xf32> to vector<16xf32>
    %100 = vector.shape_cast %99 : vector<16xf32> to vector<16x1xf32>
    %101 = vector.broadcast %100 : vector<16x1xf32> to vector<16x16xf32>
    %102 = arith.subf %98, %101 : vector<16x16xf32>
    %103 = math.exp %102 : vector<16x16xf32>
    %cst_60 = arith.constant dense<0.000000e+00> : vector<16xf32>
    %104 = vector.multi_reduction <add>, %103, %cst_60 [1] : vector<16x16xf32> to vector<16xf32>
    %105 = vector.shape_cast %104 : vector<16xf32> to vector<16x1xf32>
    %106 = tpu.reciprocal %105 {approx = true} : vector<16x1xf32> -> vector<16x1xf32>
    %107 = vector.broadcast %106 : vector<16x1xf32> to vector<16x16xf32>
    %108 = arith.mulf %103, %107 : vector<16x16xf32>
    %109 = arith.truncf %108 : vector<16x16xf32> to vector<16x16xbf16>
    %cst_61 = arith.constant dense<0.000000e+00> : vector<16x64xf32>
    %110 = tpu.matmul %109, %96, %cst_61 {dimension_numbers = #tpu.dot_dimension_numbers<[1], [0], [0], [1], [0, 0, 1, 1], [], []>} : vector<16x16xbf16>, vector<16x64xbf16>, vector<16x64xf32> -> vector<16x64xf32>
    %111 = arith.truncf %110 : vector<16x64xf32> to vector<16x64xbf16>
    %c0_62 = arith.constant 0 : index
    %c64 = arith.constant 64 : index
    %112 = vector.load %arg17[%c0_62, %c64] : memref<16x128xbf16, #tpu.memory_space<vmem>>, vector<16x64xbf16>
    tpu.vector_store %arg17[%c0_62, %c64], %111 {strides = array<i32>} : memref<16x128xbf16, #tpu.memory_space<vmem>>, vector<16x64xbf16>,
    %c0_63 = arith.constant 0 : index
    %c0_64 = arith.constant 0 : index
    %113 = vector.load %arg17[%c0_63, %c0_64] : memref<16x128xbf16, #tpu.memory_space<vmem>>, vector<16x128xbf16>
    %c0_65 = arith.constant 0 : index
    %c0_66 = arith.constant 0 : index
    %114 = vector.load %arg5[%c0_65, %c0_66] : memref<128x128xbf16, #tpu.memory_space<vmem>>, vector<128x128xbf16>
    %cst_67 = arith.constant dense<0.000000e+00> : vector<16x128xf32>
    %115 = tpu.matmul %113, %114, %cst_67 {dimension_numbers = #tpu.dot_dimension_numbers<[1], [0], [0], [1], [0, 0, 1, 1], [], []>} : vector<16x128xbf16>, vector<128x128xbf16>, vector<16x128xf32> -> vector<16x128xf32>
    %c0_68 = arith.constant 0 : index
    %c0_69 = arith.constant 0 : index
    %116 = vector.load %arg6[%c0_68, %c0_69] : memref<1x128xf32, #tpu.memory_space<vmem>>, vector<1x128xf32>
    %117 = vector.broadcast %116 : vector<1x128xf32> to vector<16x128xf32>
    %118 = arith.addf %115, %117 : vector<16x128xf32>
    %119 = arith.addf %1, %118 : vector<16x128xf32>
    %cst_70 = arith.constant dense<0.000000e+00> : vector<16xf32>
    %120 = vector.multi_reduction <add>, %119, %cst_70 [1] : vector<16x128xf32> to vector<16xf32>
    %121 = vector.shape_cast %120 : vector<16xf32> to vector<16x1xf32>
    %cst_71 = arith.constant 1.280000e+02 : f32
    %122 = vector.broadcast %cst_71 : f32 to vector<16x1xf32>
    %123 = arith.divf %121, %122 : vector<16x1xf32>
    %124 = vector.broadcast %123 : vector<16x1xf32> to vector<16x128xf32>
    %125 = arith.subf %119, %124 : vector<16x128xf32>
    %126 = arith.mulf %125, %125 : vector<16x128xf32>
    %cst_72 = arith.constant dense<0.000000e+00> : vector<16xf32>
    %127 = vector.multi_reduction <add>, %126, %cst_72 [1] : vector<16x128xf32> to vector<16xf32>
    %128 = vector.shape_cast %127 : vector<16xf32> to vector<16x1xf32>
    %cst_73 = arith.constant 1.280000e+02 : f32
    %129 = vector.broadcast %cst_73 : f32 to vector<16x1xf32>
    %130 = arith.divf %128, %129 : vector<16x1xf32>
    %131 = vector.broadcast %123 : vector<16x1xf32> to vector<16x128xf32>
    %132 = arith.subf %119, %131 : vector<16x128xf32>
    %cst_74 = arith.constant 9.99999974E-6 : f32
    %133 = vector.broadcast %cst_74 : f32 to vector<16x1xf32>
    %134 = arith.addf %130, %133 : vector<16x1xf32>
    %135 = math.rsqrt %134 : vector<16x1xf32>
    %136 = vector.broadcast %135 : vector<16x1xf32> to vector<16x128xf32>
    %137 = arith.mulf %132, %136 : vector<16x128xf32>
    %c0_75 = arith.constant 0 : index
    %c0_76 = arith.constant 0 : index
    %138 = vector.load %arg7[%c0_75, %c0_76] : memref<1x128xf32, #tpu.memory_space<vmem>>, vector<1x128xf32>
    %139 = vector.broadcast %138 : vector<1x128xf32> to vector<16x128xf32>
    %140 = arith.mulf %137, %139 : vector<16x128xf32>
    %c0_77 = arith.constant 0 : index
    %c0_78 = arith.constant 0 : index
    %141 = vector.load %arg8[%c0_77, %c0_78] : memref<1x128xf32, #tpu.memory_space<vmem>>, vector<1x128xf32>
    %142 = vector.broadcast %141 : vector<1x128xf32> to vector<16x128xf32>
    %143 = arith.addf %140, %142 : vector<16x128xf32>
    %144 = arith.truncf %143 : vector<16x128xf32> to vector<16x128xbf16>
    %c0_79 = arith.constant 0 : index
    %c0_80 = arith.constant 0 : index
    %145 = vector.load %arg9[%c0_79, %c0_80] : memref<128x512xbf16, #tpu.memory_space<vmem>>, vector<128x512xbf16>
    %cst_81 = arith.constant dense<0.000000e+00> : vector<16x512xf32>
    %146 = tpu.matmul %144, %145, %cst_81 {dimension_numbers = #tpu.dot_dimension_numbers<[1], [0], [0], [1], [0, 0, 1, 1], [], []>} : vector<16x128xbf16>, vector<128x512xbf16>, vector<16x512xf32> -> vector<16x512xf32>
    %c0_82 = arith.constant 0 : index
    %c0_83 = arith.constant 0 : index
    %147 = vector.load %arg10[%c0_82, %c0_83] : memref<1x512xf32, #tpu.memory_space<vmem>>, vector<1x512xf32>
    %148 = vector.broadcast %147 : vector<1x512xf32> to vector<16x512xf32>
    %149 = arith.addf %146, %148 : vector<16x512xf32>
    %cst_84 = arith.constant 1.702000e+00 : f32
    %150 = vector.broadcast %cst_84 : f32 to vector<16x512xf32>
    %151 = arith.mulf %150, %149 : vector<16x512xf32>
    %152 = arith.negf %151 : vector<16x512xf32>
    %153 = math.exp %152 : vector<16x512xf32>
    %cst_85 = arith.constant 1.000000e+00 : f32
    %154 = vector.broadcast %cst_85 : f32 to vector<16x512xf32>
    %155 = arith.addf %154, %153 : vector<16x512xf32>
    %156 = arith.divf %154, %155 : vector<16x512xf32>
    %157 = arith.mulf %149, %156 : vector<16x512xf32>
    %158 = arith.truncf %157 : vector<16x512xf32> to vector<16x512xbf16>
    %c0_86 = arith.constant 0 : index
    %c0_87 = arith.constant 0 : index
    %159 = vector.load %arg11[%c0_86, %c0_87] : memref<512x128xbf16, #tpu.memory_space<vmem>>, vector<512x128xbf16>
    %cst_88 = arith.constant dense<0.000000e+00> : vector<16x128xf32>
    %160 = tpu.matmul %158, %159, %cst_88 {dimension_numbers = #tpu.dot_dimension_numbers<[1], [0], [0], [1], [0, 0, 1, 1], [], []>} : vector<16x512xbf16>, vector<512x128xbf16>, vector<16x128xf32> -> vector<16x128xf32>
    %c0_89 = arith.constant 0 : index
    %c0_90 = arith.constant 0 : index
    %161 = vector.load %arg12[%c0_89, %c0_90] : memref<1x128xf32, #tpu.memory_space<vmem>>, vector<1x128xf32>
    %162 = vector.broadcast %161 : vector<1x128xf32> to vector<16x128xf32>
    %163 = arith.addf %160, %162 : vector<16x128xf32>
    %164 = arith.addf %119, %163 : vector<16x128xf32>
    %c0_91 = arith.constant 0 : index
    %c0_92 = arith.constant 0 : index
    %c0_93 = arith.constant 0 : index
    %165 = vector.load %arg13[%c0_91, %c0_92, %c0_93] : memref<1x16x128xf32, #tpu.memory_space<vmem>>, vector<1x16x128xf32>
    %166 = vector.shape_cast %165 : vector<1x16x128xf32> to vector<16x128xf32>
    %167 = vector.shape_cast %164 : vector<16x128xf32> to vector<1x16x128xf32>
    tpu.vector_store %arg13[%c0_91, %c0_92, %c0_93], %167 {strides = array<i32>} : memref<1x16x128xf32, #tpu.memory_space<vmem>>, vector<1x16x128xf32>,
    return
  }
  func.func @transform_0(%arg0: i32) -> (i32, i32, i32) {
    %c0_i32 = arith.constant 0 : i32
    %c0_i32_0 = arith.constant 0 : i32
    %c0_i32_1 = arith.constant 0 : i32
    return %arg0, %c0_i32, %c0_i32_0 : i32, i32, i32
  }
  func.func @transform_1(%arg0: i32) -> (i32, i32) {
    %c0_i32 = arith.constant 0 : i32
    %c0_i32_0 = arith.constant 0 : i32
    %c0_i32_1 = arith.constant 0 : i32
    return %c0_i32, %c0_i32_0 : i32, i32
  }
  func.func @transform_2(%arg0: i32) -> (i32, i32) {
    %c0_i32 = arith.constant 0 : i32
    %c0_i32_0 = arith.constant 0 : i32
    %c0_i32_1 = arith.constant 0 : i32
    return %c0_i32, %c0_i32_0 : i32, i32
  }
  func.func @transform_3(%arg0: i32) -> (i32, i32) {
    %c0_i32 = arith.constant 0 : i32
    %c0_i32_0 = arith.constant 0 : i32
    %c0_i32_1 = arith.constant 0 : i32
    return %c0_i32, %c0_i32_0 : i32, i32
  }
  func.func @transform_4(%arg0: i32) -> (i32, i32) {
    %c0_i32 = arith.constant 0 : i32
    %c0_i32_0 = arith.constant 0 : i32
    %c0_i32_1 = arith.constant 0 : i32
    return %c0_i32, %c0_i32_0 : i32, i32
  }
  func.func @transform_5(%arg0: i32) -> (i32, i32) {
    %c0_i32 = arith.constant 0 : i32
    %c0_i32_0 = arith.constant 0 : i32
    %c0_i32_1 = arith.constant 0 : i32
    return %c0_i32, %c0_i32_0 : i32, i32
  }
  func.func @transform_6(%arg0: i32) -> (i32, i32) {
    %c0_i32 = arith.constant 0 : i32
    %c0_i32_0 = arith.constant 0 : i32
    %c0_i32_1 = arith.constant 0 : i32
    return %c0_i32, %c0_i32_0 : i32, i32
  }
  func.func @transform_7(%arg0: i32) -> (i32, i32) {
    %c0_i32 = arith.constant 0 : i32
    %c0_i32_0 = arith.constant 0 : i32
    %c0_i32_1 = arith.constant 0 : i32
    return %c0_i32, %c0_i32_0 : i32, i32
  }
  func.func @transform_8(%arg0: i32) -> (i32, i32) {
    %c0_i32 = arith.constant 0 : i32
    %c0_i32_0 = arith.constant 0 : i32
    %c0_i32_1 = arith.constant 0 : i32
    return %c0_i32, %c0_i32_0 : i32, i32
  }
  func.func @transform_9(%arg0: i32) -> (i32, i32) {
    %c0_i32 = arith.constant 0 : i32
    %c0_i32_0 = arith.constant 0 : i32
    %c0_i32_1 = arith.constant 0 : i32
    return %c0_i32, %c0_i32_0 : i32, i32
  }
  func.func @transform_10(%arg0: i32) -> (i32, i32) {
    %c0_i32 = arith.constant 0 : i32
    %c0_i32_0 = arith.constant 0 : i32
    %c0_i32_1 = arith.constant 0 : i32
    return %c0_i32, %c0_i32_0 : i32, i32
  }
  func.func @transform_11(%arg0: i32) -> (i32, i32) {
    %c0_i32 = arith.constant 0 : i32
    %c0_i32_0 = arith.constant 0 : i32
    %c0_i32_1 = arith.constant 0 : i32
    return %c0_i32, %c0_i32_0 : i32, i32
  }
  func.func @transform_12(%arg0: i32) -> (i32, i32, i32) {
    %c0_i32 = arith.constant 0 : i32
    %c0_i32_0 = arith.constant 0 : i32
    %c0_i32_1 = arith.constant 0 : i32
    return %arg0, %c0_i32, %c0_i32_0 : i32, i32, i32
  }
}

</mosaic_0001>

<bundles_post_ra>
// kernel: tpu_custom_call.1
= control target key start
LH: loop header
LB: loop body
LE: loop exit
PB: predicated region body
PF: predicated region fallthrough
CT: control target
= control target key end

     0   :  { %s3338_s0 = inlined_call_operand.hbm [shape: f32[2,16,128], index: 0, kind: input, shape index: {}]   ;;  %s3339_s1 = inlined_call_operand.vmem [shape: f32[1,128], index: 1, kind: input, shape index: {}]   ;;  %s3340_s2 = inlined_call_operand.vmem [shape: f32[1,128], index: 2, kind: input, shape index: {}]   ;;  %s3341_s3 = inlined_call_operand.hbm [shape: bf16[128,384], index: 3, kind: input, shape index: {}]   ;;  %s3342_s4 = inlined_call_operand.hbm [shape: bf16[128,128], index: 4, kind: input, shape index: {}]   ;;  %s3343_s5 = inlined_call_operand.vmem [shape: f32[1,128], index: 5, kind: input, shape index: {}]   ;;  %s3344_s6 = inlined_call_operand.vmem [shape: f32[1,128], index: 6, kind: input, shape index: {}]   ;;  %s3345_s7 = inlined_call_operand.vmem [shape: f32[1,128], index: 7, kind: input, shape index: {}]   ;;  %s3346_s8 = inlined_call_operand.hbm [shape: bf16[128,512], index: 8, kind: input, shape index: {}]   ;;  %s3347_s9 = inlined_call_operand.vmem [shape: f32[1,512], index: 9, kind: input, shape index: {}]   ;;  %s3348_s10 = inlined_call_operand.hbm [shape: bf16[512,128], index: 10, kind: input, shape index: {}]   ;;  %s3349_s11 = inlined_call_operand.vmem [shape: f32[1,128], index: 11, kind: input, shape index: {}]   ;;  %s3350_s12 = inlined_call_operand.hbm [shape: f32[2,16,128], index: 12, kind: output, shape index: {}]  }
   0x1   :  { %3357 = sst [smem:[#allocation22_spill]] %s3341_s3 }
   0x2   :  { %3358 = sst [smem:[#allocation23_spill]] %s3347_s9 }
   0x3   :  { %3359 = sst [smem:[#allocation24_spill]] %s3349_s11 }
   0x4   :  { %3360 = sst [smem:[#allocation25_spill]] %s3350_s12 }
   0x5   :  { %17 = vsyncpa [#allocation7], 0 }
   0x6   :  { %19 = vsyncpa [#allocation7 + $0x1], 0 }
   0x7   :  { %20 = vsyncpa [#allocation10], 0 }
   0x8   :  { %21 = vsyncpa [#allocation13], 0 }
   0x9   :  { %22 = vsyncpa [#allocation8], 0 }
   0xa   :  { %24 = vsyncpa [#allocation8 + $0x1], 0  ;;  %s2909_s21 = smov 0   ;;  %s2911_s22 = smov 0  }
   0xb   :  { %s2913_s23 = smov 0   ;;  %s2915_s24 = smov 0  }
   0xc LB: > { %3361 = sst [smem:[#allocation20_spill]] %s2810_s21  ;;  %s2930_s25 = sadd.s32 4294967295, %s2822_s24   ;;  %s2822_s24 = sphi %s2915_s24, %s3388_s24   ;;  %s2818_s23 = sphi %s2913_s23, %s3387_s23   ;;  %s2814_s22 = sphi %s2911_s22, %s3386_s22   ;;  %s2810_s21 = sphi %s2909_s21, %s3385_s21  }
   0xd   : > { %s2057_s26 = sadd.s32 4294967294, %s2822_s24   ;;  %p50_p0 = scmp.ne.s32.totalorder %s2814_s22, %s2810_s21 }
   0xe   : > { %p3352_p1 = scmp.eq.s32.totalorder %s2930_s25, 0  ;;  %p311_p3 = scmp.eq.s32.totalorder %s2057_s26, 1 }
   0xf   : > { %p2058_p5 = scmp.ge.s32.totalorder %s2822_s24, 1  ;;  %p318_p7 = scmp.lt.s32.totalorder %s2822_s24, 3 }
  0x10   : > { %p2939_p4 = por %p3352_p1, %p50_p0  ;;  %p2944_p6 = por %p311_p3, %p50_p0 }
  0x11   : > { %p2949_p8 = pnand %p2058_p5, %p318_p7  ;;  %s2824_s30 = smov [#allocation9]  }
  0x12   : > { %s3362_s27 = scalar_select %p2939_p4, 1, 0 }
  0x13   : > { %s3363_s28 = scalar_select %p2944_p6, 1, 0 }
  0x14   : > { %s3365_s29 = scalar_select %p2949_p8, 1, 0 }
  0x15   : > { %3364 = sst [smem:[#allocation21_spill]] %s3363_s28  ;;  %s336_s13 = sshll.u32 %s2824_s30, 4  ;;  %s2953_s13 = int_to_ptr.vmem [resolvable:$true] %s336_s13 }
  0x16   : > { %p2349_p9 = pneg %p2949_p8  ;;  %s2825_s15 = smov [#allocation12]  }
  0x17   : > { %s371_s16 = sshll.u32 %s2825_s15, 4  ;;  %s3367_s3 = sld [smem:[#allocation22_spill]]  ;;  %s2964_s16 = int_to_ptr.vmem [resolvable:$true] %s371_s16 }
  0x18   : > { %p2960_p11 = pnand %p2349_p9, %p3352_p1 }
  0x1a   : > { %p2974_p13 = pneg %p2960_p11 }
  0x1d   : > { %s2606_s19 = scalar_lea.hbm %s3367_s3, 3072 }
  0x1e   : > { %p2607_p12 = scmp.ne.s32.totalorder %s3367_s3, %s2606_s19  ;;  %p2613_p5 = scmp.lt.u32.totalorder %s2606_s19, %s3367_s3 }
  0x20   : > { %p2609_p0 = pnand %p2974_p13, %p2607_p12 }
  0x22   : > { %p2610_p3 = pneg %p2609_p0 }
  0x24   : > { %p2615_p7 = pnand %p2613_p5, %p2610_p3 }
  0x26   : > { %2618 = shalt.err (!%p2615_p7)
}
  0x27   : > { %s2619_s17 = scalar_lea.vmem %s2953_s13, 3072  ;;  %p2627_p2 = scmp.lt.s32.totalorder %s2953_s13, %s2953_s13 }
  0x28   : > { %p2620_p9 = scmp.ne.s32.totalorder %s2953_s13, %s2619_s17  ;;  %p2628_p6 = scmp.lt.s32.totalorder %s2619_s17, %s2619_s17 }
  0x2a   : > { %p2622_p10 = pnand %p2620_p9, %p2974_p13  ;;  %p2629_p12 = por %p2628_p6, %p2627_p2 }
  0x2c   : > { %p2623_p1 = pneg %p2622_p10 }
  0x2e   : > { %p2630_p0 = pnand %p2629_p12, %p2623_p1 }
  0x30   : > { %2633 = shalt.err (!%p2630_p0)
}
  0x31   : > { %s2826_s18 = smov 192   ;;  %s2827_s28 = smov 12  }
  0x32   : > { %2352 = dma.hbm_to_vmem [thread:$0]  (!%p2960_p11), %s3367_s3, 3072, %s2953_s13, [#allocation10], %s2826_s18, %s2826_s18, %s2827_s28  }
  0x33   : > { %s2634_s21 = scalar_lea.hbm %s3346_s8, 4096 }
  0x34   : > { %p2635_p2 = scmp.ne.s32.totalorder %s3346_s8, %s2634_s21  ;;  %p2641_p10 = scmp.lt.u32.totalorder %s2634_s21, %s3346_s8 }
  0x36   : > { %p2637_p1 = pnand %p2635_p2, %p2974_p13 }
  0x38   : > { %p2638_p6 = pneg %p2637_p1 }
  0x3a   : > { %p2643_p3 = pnand %p2641_p10, %p2638_p6 }
  0x3c   : > { %2646 = shalt.err (!%p2643_p3)
}
  0x3d   : > { %s2647_s13 = scalar_lea.vmem %s2964_s16, 4096  ;;  %p2655_p12 = scmp.lt.s32.totalorder %s2964_s16, %s2964_s16 }
  0x3e   : > { %p2648_p5 = scmp.ne.s32.totalorder %s2964_s16, %s2647_s13  ;;  %p2656_p0 = scmp.lt.s32.totalorder %s2647_s13, %s2647_s13 }
  0x40   : > { %p2650_p7 = pnand %p2648_p5, %p2974_p13  ;;  %p2657_p2 = por %p2656_p0, %p2655_p12 }
  0x42   : > { %p2651_p9 = pneg %p2650_p7 }
  0x44   : > { %p2658_p1 = pnand %p2657_p2, %p2651_p9 }
  0x46   : > { %2661 = shalt.err (!%p2658_p1)
}
  0x47   : > { %s2828_s11 = smov 256   ;;  %s2829_s9 = smov 16  }
  0x48   : > { %2358 = dma.hbm_to_vmem [thread:$0]  (!%p2960_p11), %s3346_s8, 4096, %s2964_s16, [#allocation13], %s2828_s11, %s2828_s11, %s2829_s9  }
  0x49   : > { %s2830_s18 = smov [#allocation11]   ;;  %s2662_s26 = scalar_lea.hbm %s3342_s4, 1024 }
  0x4a   : > { %s349_s28 = sshll.u32 %s2830_s18, 4  ;;  %p2663_p6 = scmp.ne.s32.totalorder %s3342_s4, %s2662_s26  ;;  %s350_s28 = int_to_ptr.vmem [resolvable:$true] %s349_s28 }
  0x4b   : > { %p2669_p5 = scmp.lt.u32.totalorder %s2662_s26, %s3342_s4 }
  0x4c   : > { %p2665_p10 = pnand %p2663_p6, %p2974_p13 }
  0x4e   : > { %p2666_p3 = pneg %p2665_p10 }
  0x50   : > { %p2671_p7 = pnand %p2669_p5, %p2666_p3 }
  0x52   : > { %2674 = shalt.err (!%p2671_p7)
}
  0x53   : > { %s2675_s16 = scalar_lea.vmem %s350_s28, 1024  ;;  %p2683_p2 = scmp.lt.s32.totalorder %s350_s28, %s350_s28 }
  0x54   : > { %p2676_p9 = scmp.ne.s32.totalorder %s350_s28, %s2675_s16  ;;  %p2684_p1 = scmp.lt.s32.totalorder %s2675_s16, %s2675_s16 }
  0x56   : > { %p2678_p12 = pnand %p2676_p9, %p2974_p13  ;;  %p2685_p4 = por %p2684_p1, %p2683_p2 }
  0x58   : > { %p2679_p0 = pneg %p2678_p12 }
  0x5a   : > { %p2686_p8 = pnand %p2685_p4, %p2679_p0 }
  0x5c   : > { %2689 = shalt.err (!%p2686_p8)
}
  0x5d   : > { %s2831_s11 = smov 64   ;;  %s2832_s9 = smov 4  }
  0x5e   : > { %2355 = dma.hbm_to_vmem [thread:$0]  (!%p2960_p11), %s3342_s4, 1024, %s350_s28, [#allocation10], %s2831_s11, %s2831_s11, %s2832_s9  }
  0x5f   : > { %s2833_s21 = smov [#allocation14]   ;;  %s2690_s26 = scalar_lea.hbm %s3348_s10, 4096 }
  0x60   : > { %s387_s18 = sshll.u32 %s2833_s21, 4  ;;  %p2691_p4 = scmp.ne.s32.totalorder %s3348_s10, %s2690_s26  ;;  %s388_s18 = int_to_ptr.vmem [resolvable:$true] %s387_s18 }
  0x61   : > { %p2697_p10 = scmp.lt.u32.totalorder %s2690_s26, %s3348_s10 }
  0x62   : > { %p2693_p8 = pnand %p2691_p4, %p2974_p13 }
  0x64   : > { %p2694_p6 = pneg %p2693_p8 }
  0x66   : > { %p2699_p3 = pnand %p2697_p10, %p2694_p6 }
  0x68   : > { %2702 = shalt.err (!%p2699_p3)
}
  0x69   : > { %s2703_s28 = scalar_lea.vmem %s388_s18, 4096  ;;  %p2711_p12 = scmp.lt.s32.totalorder %s388_s18, %s388_s18 }
  0x6a   : > { %p2704_p5 = scmp.ne.s32.totalorder %s388_s18, %s2703_s28  ;;  %p2712_p0 = scmp.lt.s32.totalorder %s2703_s28, %s2703_s28 }
  0x6c   : > { %p2706_p7 = pnand %p2704_p5, %p2974_p13  ;;  %p2713_p2 = por %p2712_p0, %p2711_p12 }
  0x6e   : > { %p2707_p9 = pneg %p2706_p7 }
  0x70   : > { %p2714_p1 = pnand %p2713_p2, %p2707_p9 }
  0x72   : > { %2717 = shalt.err (!%p2714_p1)
}
  0x73   : > { %2361 = dma.hbm_to_vmem [thread:$0]  (!%p2960_p11), %s3348_s10, 4096, %s388_s18, [#allocation13], %s2831_s11, %s2831_s11, %s2832_s9  }
  0x74   : > { %s3055_s30 = sadd.s32 1, %s2822_s24   ;;  %s37_s21 = sadd.s32 1, %s2818_s23 }
  0x75   : > { %s34_s14 = ssub.s32 %s2822_s24, %s3055_s30  ;;  %p44_p13 = scmp.ne.s32.totalorder %s2818_s23, %s2814_s22 }
  0x76   : > { %p35_p4 = scmp.eq.s32.totalorder %s34_s14, 0  ;;  %p45_p8 = scmp.eq.s32.totalorder %s2822_s24, 0 }
  0x77   : > { %p3369_p6 = scmp.eq.s32.totalorder %s2930_s25, 1  ;;  %p2374_p3 = scmp.lt.s32.totalorder %s2822_s24, 2 }
  0x78   : > { %s3071_s20 = scalar_select %p35_p4, %s2818_s23, %s37_s21  }
  0x79   : > { %p3065_p10 = por %p3369_p6, %p44_p13  ;;  %p46_p5 = por %p45_p8, %p44_p13 }
  0x7a   : > { %s404_s26 = sand.u32 1, %s2818_s23   ;;  %s2193_s11 = sshll.u32 %s2822_s24, 8 }
  0x7b   : > { %s2064_s15 = sshll.u32 %s404_s26, 4  ;;  %s3078_s17 = scalar_lea.hbm %s3338_s0, %s2193_s11 }
  0x7c   : > { %s408_s13 = scalar_lea.vmem [#allocation6], %s2064_s15  ;;  %p3082_p11 = pnand %p2374_p3, %p46_p5 }
  0x7d   : > { %s415_s16 = sshll.u32 %s408_s13, 4  ;;  %s3086_s3 = scalar_lea.sflag [#allocation7], %s404_s26  ;;  %s3080_s16 = int_to_ptr.vmem [resolvable:$true] %s415_s16 }
  0x7e   : > { %s2718_s12 = scalar_lea.hbm %s3078_s17, 256  ;;  %p2720_p9 = pneg %p3082_p11 }
  0x7f   : > { %p2719_p7 = scmp.ne.s32.totalorder %s3078_s17, %s2718_s12  ;;  %s2723_s15 = scalar_lea.hbm %s3338_s0, 512 }
  0x80   : > { %p2724_p2 = scmp.lt.u32.totalorder %s3078_s17, %s3338_s0  ;;  %p2725_p1 = scmp.lt.u32.totalorder %s2723_s15, %s2718_s12 }
  0x81   : > { %p2721_p12 = pnand %p2720_p9, %p2719_p7  ;;  %p2727_p4 = scmp.lt.u32.totalorder %s2718_s12, %s3078_s17 }
  0x82   : > { %p2726_p13 = por %p2725_p1, %p2724_p2 }
  0x83   : > { %p2722_p0 = pneg %p2721_p12 }
  0x84   : > { %p2728_p8 = por %p2727_p4, %p2726_p13 }
  0x86   : > { %p2729_p6 = pnand %p2728_p8, %p2722_p0 }
  0x88   : > { %2732 = shalt.err (!%p2729_p6)
}
  0x89   : > { %s2733_s26 = scalar_lea.vmem %s3080_s16, 256  ;;  %s2834_s18 = smov [#allocation6]  }
  0x8a   : > { %p2734_p3 = scmp.ne.s32.totalorder %s3080_s16, %s2733_s26  ;;  %s2738_s13 = sshll.u32 %s2834_s18, 4  ;;  %s2739_s13 = int_to_ptr.vmem [resolvable:$false] %s2738_s13 }
  0x8b   : > { %s2740_s21 = scalar_lea.vmem %s2739_s13, 512  ;;  %p2741_p12 = scmp.lt.s32.totalorder %s3080_s16, %s2739_s13 }
  0x8c   : > { %p2736_p5 = pnand %p2734_p3, %p2720_p9  ;;  %p2742_p2 = scmp.lt.s32.totalorder %s2740_s21, %s2733_s26 }
  0x8e   : > { %p2737_p7 = pneg %p2736_p5  ;;  %p2743_p1 = por %p2742_p2, %p2741_p12 }
  0x90   : > { %p2744_p13 = pnand %p2743_p1, %p2737_p7 }
  0x92   : > { %2747 = shalt.err (!%p2744_p13)
}
  0x93   : > { %s2835_s12 = smov 128   ;;  %s2836_s14 = smov 8  }
  0x94   : > { %2365 = dma.hbm_to_vmem [thread:$0]  (!%p3082_p11), %s3078_s17, 256, %s3080_s16, %s3086_s3, %s2835_s12, %s2835_s12, %s2836_s14  }
  0x95   : > { %p3372_p9 = scmp.ne.s32.totalorder %s3365_s29, 0 }
  0x96   : > { %s3117_s15 = sand.u32 (!%p3372_p9), 1, %s2814_s22   ;;  %p3373_p0 = scmp.ne.s32.totalorder (!%p3372_p9), %s3362_s27, 0 }
  0x97   : > { %427 = sbr.rel (%p3372_p9) target bundleno = 3150 (0xc4e), region = 68  ;;  %s2068_s11 = sshll.u32 (!%p3372_p9), %s3117_s15, 4 }
  0x98   : > { %s430_s9 = scalar_lea.sflag (!%p3372_p9), [#allocation7], %s3117_s15  ;;  %s433_s26 = scalar_lea.vmem (!%p3372_p9), [#allocation6], %s2068_s11 }
  0x9e   : > { %2793 = dma.done.wait (%p3373_p0), %s430_s9, 256  }
  0x9f   : > { %2795 = vsyncadd (%p3373_p0), %s430_s9, 4294967040  ;;  %p3374_p11 = scmp.eq.s32.totalorder %s2930_s25, 0 }
  0xa1   : > { %2797 = dma.done.wait (%p3374_p11), [#allocation10], 4096   ;;  %p3375_p4 = pmov %p3374_p11 }
  0xa3   : > { %2799 = vsyncadd (%p3375_p4), [#allocation10], 4294963200  ;;  %p3376_p8 = pmov %p3375_p4 }
  0xa4   : > { %p3377_p6 = pmov %p3375_p4 }
  0xa5   : > { %2801 = dma.done.wait (%p3376_p8), [#allocation13], 8192  }
  0xa6   : > { %2803 = vsyncadd (%p3377_p6), [#allocation13], 4294959104  ;;  %v3135_v0 = vld [vmem:[%s433_s26] sm:$0xff]  ;;  %v3137_v1 = vld [vmem:[%s433_s26 + $0x8] sm:$0xff]  ;;  %v2837_v4 = vmov 0.0   ;;  %v2838_v30 = vmov 0  }
  0xa7   : > { %493 = vadd.xlane.f32.xlu0 %v3135_v0  ;;  %v2430_v2 = vld [vmem:[#allocation9 + $0x4] ss:$12 sps:$4 sm:$0xff]   ;;  %v2432_v3 = vld [vmem:[#allocation9] ss:$12 sps:$4 sm:$0xff]   ;;  %2265 = vmatprep.subr.bf16.mxu1 %v2837_v4  ;;  %v2433_v5 = vld [vmem:[#allocation9 + $0x8] ss:$12 sps:$4 sm:$0xff]  }
  0xa8   : > { %v2434_v6 = vld [vmem:[#allocation9 + $0x1c] ss:$12 sps:$4 sm:$0xff]   ;;  %695 = vmatprep.subr.bf16.mxu0 %v2430_v2  ;;  %2266 = vmatpush3.bf16.msra.mxu1 %v2433_v5  ;;  %v2436_v15 = vld [vmem:[#allocation9 + $0x18] ss:$12 sps:$4 sm:$0xff]   ;;  %v2437_v16 = vld [vmem:[#allocation9 + $0x20] ss:$12 sps:$4 sm:$0xff]  }
  0xa9   : > { %696 = vmatpush1.bf16.msra.mxu0 %v2432_v3  ;;  %2267 = vmatprep.subr.bf16.mxu1 %v2837_v4  ;;  %v2438_v17 = vld [vmem:[#allocation9 + $0x34] ss:$12 sps:$4 sm:$0xff]   ;;  %v2440_v18 = vld [vmem:[#allocation9 + $0x30] ss:$12 sps:$4 sm:$0xff]   ;;  %v2441_v19 = vld [vmem:[#allocation9 + $0x38] ss:$12 sps:$4 sm:$0xff]  }
  0xaa   : > { %697 = vmatprep.subr.bf16.mxu0 %v2434_v6  ;;  %v2442_v20 = vld [vmem:[#allocation9 + $0x4c] ss:$12 sps:$4 sm:$0xff]   ;;  %v2444_v21 = vld [vmem:[#allocation9 + $0x48] ss:$12 sps:$4 sm:$0xff]   ;;  %v2445_v22 = vld [vmem:[#allocation9 + $0x50] ss:$12 sps:$4 sm:$0xff]   ;;  %727 = vmatprep.mubr.bf16.mxu0 %v2838_v30 }
  0xab   : > { %495 = vadd.xlane.f32.xlu0 %v3137_v1  ;;  %v2446_v23 = vld [vmem:[#allocation9 + $0x64] ss:$12 sps:$4 sm:$0xff]   ;;  %v2448_v24 = vld [vmem:[#allocation9 + $0x60] ss:$12 sps:$4 sm:$0xff]   ;;  %v2449_v25 = vld [vmem:[#allocation9 + $0x68] ss:$12 sps:$4 sm:$0xff]  }
  0xac   : > { %2268 = vmatpush3.bf16.msra.mxu1 %v2437_v16  ;;  %v2450_v26 = vld [vmem:[#allocation9 + $0x7c] ss:$12 sps:$4 sm:$0xff]   ;;  %v2452_v27 = vld [vmem:[#allocation9 + $0x78] ss:$12 sps:$4 sm:$0xff]   ;;  %v2453_v28 = vld [vmem:[#allocation9 + $0x80] ss:$12 sps:$4 sm:$0xff]  }
  0xad   : > { %698 = vmatpush1.bf16.msra.mxu0 %v2436_v15  ;;  %2269 = vmatprep.subr.bf16.mxu1 %v2837_v4  ;;  %v2454_v29 = vld [vmem:[#allocation9 + $0x94] ss:$12 sps:$4 sm:$0xff]   ;;  %vm2839_vm0 = vmmov 0   ;;  %v2456_v31 = vld [vmem:[#allocation9 + $0x90] ss:$12 sps:$4 sm:$0xff]   ;;  %vm782_vm1 = vcmask 523264  }
  0xae   : > { %699 = vmatprep.subr.bf16.mxu0 %v2438_v17  ;;  %2281 = vmatprep.mubr.msk.bf16.mxu1 %vm2839_vm0, %v2837_v4  ;;  %v2457_v32 = vld [vmem:[#allocation9 + $0x98] ss:$12 sps:$4 sm:$0xff]   ;;  %v2460_v34 = vld [vmem:[#allocation9 + $0xa8] ss:$12 sps:$4 sm:$0xff]   ;;  %v2461_v35 = vld [vmem:[#allocation9 + $0xb0] ss:$12 sps:$4 sm:$0xff]  }
  0xaf   : > { %v2458_v33 = vld [vmem:[#allocation9 + $0xac] ss:$12 sps:$4 sm:$0xff]   ;;  %v2074_v44 = vld [vmem:[%s3339_s1] ss:$0 sm:$0xff]  ;;  %vm865_vm4 = vcmask 130048   ;;  %s2840_s28 = smov 64  }
  0xb0   : > { %2270 = vmatpush3.bf16.msra.mxu1 %v2441_v19  ;;  %v2075_v48 = vld [vmem:[%s3340_s2] ss:$0 sm:$0xff]  ;;  %vm1057_vm5 = vcmask 1048064   ;;  %s3378_s27 = sld [smem:[#allocation23_spill]]  ;;  %s3379_s16 = sld [smem:[#allocation24_spill]] }
  0xb1   : > { %700 = vmatpush1.bf16.msra.mxu0 %v2440_v18  ;;  %2271 = vmatprep.subr.bf16.mxu1 %v2837_v4  ;;  %s2194_s18 = sshll.u32 %s2930_s25, 8  ;;  %s3380_s12 = sld [smem:[#allocation25_spill]] }
  0xb2   : > { %701 = vmatprep.subr.bf16.mxu0 %v2442_v20  ;;  %s2841_s25 = smov [#allocation15]  }
  0xb3   : > { %s2752_s26 = sshll.u32 %s2841_s25, 4  ;;  %s2753_s26 = int_to_ptr.vmem [resolvable:$false] %s2752_s26 }
  0xb4   : > { %2272 = vmatpush3.bf16.msra.mxu1 %v2445_v22 }
  0xb5   : > { %702 = vmatpush1.bf16.msra.mxu0 %v2444_v21  ;;  %2273 = vmatprep.subr.bf16.mxu1 %v2837_v4 }
  0xb6   : > { %703 = vmatprep.subr.bf16.mxu0 %v2446_v23 }
  0xb7   : > { %s3293_s14 = scalar_lea.hbm %s3380_s12, %s2194_s18 }
  0xb8   : > { %2274 = vmatpush3.bf16.msra.mxu1 %v2449_v25 }
  0xb9   : > { %704 = vmatpush1.bf16.msra.mxu0 %v2448_v24  ;;  %2275 = vmatprep.subr.bf16.mxu1 %v2837_v4 }
  0xba   : > { %705 = vmatprep.subr.bf16.mxu0 %v2450_v26 }
  0xbc   : > { %2276 = vmatpush3.bf16.msra.mxu1 %v2453_v28 }
  0xbd   : > { %706 = vmatpush1.bf16.msra.mxu0 %v2452_v27  ;;  %2277 = vmatprep.subr.bf16.mxu1 %v2837_v4 }
  0xbe   : > { %707 = vmatprep.subr.bf16.mxu0 %v2454_v29 }
  0xc0   : > { %2278 = vmatpush3.bf16.msra.mxu1 %v2457_v32 }
  0xc1   : > { %708 = vmatpush1.bf16.msra.mxu0 %v2456_v31  ;;  %2279 = vmatprep.subr.bf16.mxu1 %v2837_v4 }
  0xc2   : > { %709 = vmatprep.subr.bf16.mxu0 %v2458_v33 }
  0xc4   : > { %2280 = vmatpush3.bf16.msra.mxu1 %v2461_v35 }
  0xc5   : > { %710 = vmatpush1.bf16.msra.mxu0 %v2460_v34  ;;  %2285 = vmatprep.subr.bf16.mxu1 %v2837_v4 }
  0xc6   : > { %2309 = vmatprep.subr.bf16.mxu0 %v2837_v4 }
 0x134   : > { %v494_v7 = vpop.xlane.xlu0 %493 }
 0x135   : > { %v498_v8 = vmul.f32 0.0078125, %v494_v7 }
 0x137   : > { %v3144_v9 = vsub.f32 %v3135_v0, %v498_v8 }
 0x138   : > { %v496_v10 = vpop.xlane.xlu0 %495 }
 0x139   : > { %v499_v11 = vmul.f32 0.0078125, %v496_v10  ;;  %v502_v12 = vmul.f32 %v3144_v9, %v3144_v9 }
 0x13b   : > { %v3149_v13 = vsub.f32 %v3137_v1, %v499_v11  ;;  %504 = vadd.xlane.f32.xlu1 %v502_v12 }
 0x13d   : > { %v503_v14 = vmul.f32 %v3149_v13, %v3149_v13 }
 0x13f   : > { %506 = vadd.xlane.f32.xlu1 %v503_v14 }
 0x1c8   : > { %v505_v36 = vpop.xlane.xlu1 %504 }
 0x1c9   : > { %v508_v37 = vmul.f32 0.0078125, %v505_v36 }
 0x1cb   : > { %v510_v38 = vadd.f32 1e-05, %v508_v37 }
 0x1cc   : > { %v507_v39 = vpop.xlane.xlu1 %506 }
 0x1cd   : > { %2550 = vrsqrt.f32 %v510_v38  ;;  %v509_v40 = vmul.f32 0.0078125, %v507_v39 }
 0x1cf   : > { %v511_v41 = vadd.f32 1e-05, %v509_v40 }
 0x1d1   : > { %2552 = vrsqrt.f32 %v511_v41 }
 0x1d7   : > { %v2551_v42 = vpop.eup %2550 }
 0x1d8   : > { %v514_v43 = vmul.f32 %v2551_v42, %v3144_v9  ;;  %v806_v9 = vlaneseq }
 0x1da   : > { %v523_v47 = vmul.f32 %v2074_v44, %v514_v43  ;;  %v3188_v10 = vshrl.u32 %v806_v9, 7  ;;  %v810_v11 = vand.u32 127, %v806_v9 }
 0x1db   : > { %v2553_v45 = vpop.eup %2552 }
 0x1dc   : > { %v515_v46 = vmul.f32 %v2553_v45, %v3149_v13  ;;  %v532_v50 = vadd.f32 %v2075_v48, %v523_v47  ;;  %v808_v12 = vadd.s32 8, %v3188_v10  ;;  %vm811_vm2 = vcmp.gt.s32.totalorder %v810_v11, %v3188_v10 }
 0x1dd   : > { %v813_v13 = vsel %vm811_vm2, -1e+30, %v2837_v4 }
 0x1de   : > { %v524_v49 = vmul.f32 %v2074_v44, %v515_v46  ;;  %vm812_vm3 = vcmp.gt.s32.totalorder %v810_v11, %v808_v12 }
 0x1df   : > { %v814_v15 = vsel %vm812_vm3, -1e+30, %v2837_v4 }
 0x1e0   : > { %v533_v51 = vadd.f32 %v2075_v48, %v524_v49 }
 0x1e2   : > { %v534_v52 = vpack.c.bf16 %v533_v51, %v532_v50 }
 0x1e4   : > { %728 = vmatmul.mubr.bf16.vlgmr.msra.gmra.mrb[0].mxu0 %v534_v52  ;;  %2282 = vmatmul.mubr.bf16.vlgmr.msra.gmra.mrb[0].mxu1 %v534_v52 }
 0x1e5   : > { %2287 = vmatprep.mubr.msk.bf16.mxu1 %vm2839_vm0, %v2837_v4  ;;  %2325 = vmatprep.mubr.msk.bf16.mxu0 %vm2839_vm0, %v2837_v4 }
 0x2b7   : > { %v729_v53 = vpop.f32.mrb[0].mxu0  ;;  %v772_v54 = vpop.f32.mrb[0].mxu1 }
 0x2b8   : > { %v731_v55 = vpop.f32.mrb[1].mxu0  ;;  %v2283_v56 = vpop.f32.mrb[1].mxu1  ;;  %v779_v59 = vmul.f32 0.125, %v729_v53 }
 0x2b9   : > { %v733_v57 = vpop.f32.mrb[2].mxu0  ;;  %v775_v58 = vpop.f32.mrb[2].mxu1 }
 0x2ba   : > { %v780_v60 = vmul.f32 0.125, %v733_v57  ;;  %v3176_v61 = vpack.c.bf16 %v775_v58, %v772_v54  ;;  %v735_v62 = vpop.f32.mrb[3].mxu0  ;;  %v2284_v63 = vpop.f32.mrb[3].mxu1 }
 0x2bb   : > { %v784_v2 = vpack.c.bf16 %v735_v62, %v731_v55 }
 0x2bc   : > { %v781_v3 = vpack.c.bf16 %v780_v60, %v779_v59  ;;  %787 = vst.msk [vmem:[#allocation4] sm:$0xff] %vm782_vm1, %v3176_v61 }
 0x2bd   : > { %785 = vst.msk [vmem:[#allocation3] sm:$0xff] %vm782_vm1, %v784_v2 }
 0x2be   : > { %783 = vst.msk [vmem:[#allocation2] sm:$0xff] %vm782_vm1, %v781_v3 }
 0x2c3   : > { %v817_v8 = vld [vmem:[#allocation4] sm:$0xff] }
 0x2c4   : > { %v816_v5 = vld [vmem:[#allocation3] sm:$0xff] }
 0x2c5   : > { %v822_v6 = vsel %vm782_vm1, %v816_v5, 0  ;;  %v815_v7 = vld [vmem:[#allocation2] sm:$0xff] }
 0x2c6   : > { %2286 = vmatpush3.bf16.xpose.msra.mxu1 %v822_v6 }
 0x2c7   : > { %2291 = vmatprep.subr.bf16.mxu1 %v2837_v4 }
 0x2cd   : > { %2288 = vmatmul.mubr.msk.bf16.vlgmr.msra.gmra.mrb[4].mxu1 %vm782_vm1, %v815_v7 }
 0x2ce   : > { %2292 = vmatpush3.bf16.msra.mxu1 %v817_v8  ;;  %2293 = vmatprep.mubr.msk.bf16.mxu1 %vm2839_vm0, %v2837_v4 }
 0x2cf   : > { %2297 = vmatprep.subr.bf16.mxu1 %v2837_v4 }
 0x3a0   : > { %v858_v14 = vpop.f32.mrb[4].mxu1 }
 0x3a1   : > { %v859_v16 = vadd.f32 %v858_v14, %v813_v13  ;;  %v2289_v17 = vpop.f32.mrb[5].mxu1 }
 0x3a2   : > { %v861_v18 = vpop.f32.mrb[6].mxu1 }
 0x3a3   : > { %v862_v19 = vadd.f32 %v861_v18, %v814_v15  ;;  %v2290_v20 = vpop.f32.mrb[7].mxu1  ;;  %v866_v21 = vsel %vm865_vm4, %v859_v16, -inf }
 0x3a4   : > { %867 = vmax.xlane.f32.xlu0 %v866_v21  ;;  %v2464_v20 = vld [vmem:[#allocation11 + $0x10] sm:$0xff]   ;;  %v2465_v21 = vld [vmem:[#allocation11 + $0x18] sm:$0xff]  }
 0x3a5   : > { %v869_v22 = vsel %vm865_vm4, %v862_v19, -inf }
 0x3a6   : > { %870 = vmax.xlane.f32.xlu1 %v869_v22  ;;  %v2466_v22 = vld [vmem:[#allocation11 + $0x20] sm:$0xff]  }
 0x431   : > { %v868_v23 = vpop.xlane.xlu0 %867 }
 0x432   : > { %v872_v24 = vsub.f32 %v859_v16, %v868_v23  ;;  %v2467_v23 = vld [vmem:[#allocation11 + $0x28] sm:$0xff]  }
 0x433   : > { %v871_v25 = vpop.xlane.xlu1 %870 }
 0x434   : > { %v874_v26 = vmul.f32 1.442695, %v872_v24  ;;  %v873_v27 = vsub.f32 %v862_v19, %v871_v25  ;;  %v2462_v19 = vld [vmem:[#allocation11] sm:$0xff]   ;;  %v2468_v24 = vld [vmem:[#allocation11 + $0x30] sm:$0xff]   ;;  %v2469_v25 = vld [vmem:[#allocation11 + $0x38] sm:$0xff]  }
 0x435   : > { %2310 = vmatpush3.bf16.msra.mxu0 %v2462_v19  ;;  %v2515_v19 = vld [vmem:[#allocation12 + $0xe8] ss:$16 sps:$4 sm:$0xff]  }
 0x436   : > { %2554 = vpow2.f32 %v874_v26  ;;  %v876_v28 = vmul.f32 1.442695, %v873_v27  ;;  %2311 = vmatprep.subr.bf16.mxu0 %v2837_v4 }
 0x438   : > { %2556 = vpow2.f32 %v876_v28 }
 0x440   : > { %v2555_v29 = vpop.eup %2554 }
 0x441   : > { %v878_v31 = vsel %vm865_vm4, %v2555_v29, 0.0 }
 0x442   : > { %v2557_v32 = vpop.eup %2556  ;;  %879 = vadd.xlane.f32.xlu0 %v878_v31 }
 0x443   : > { %v881_v33 = vsel %vm865_vm4, %v2557_v32, 0.0 }
 0x444   : > { %882 = vadd.xlane.f32.xlu1 %v881_v33 }
 0x455   : > { %789 = vrot.lane.b32.xlu1 %v781_v3, %s2840_s28 }
 0x458   : > { %795 = vrot.lane.b32.xlu0 %v784_v2, %s2840_s28 }
 0x4cf   : > { %v880_v34 = vpop.xlane.xlu0 %879 }
 0x4d0   : > { %2558 = vrcp.f32 %v880_v34  ;;  %v2104_v34 = vld [vmem:[%s3343_s5] ss:$0 sm:$0xff] }
 0x4d1   : > { %v883_v35 = vpop.xlane.xlu1 %882 }
 0x4d2   : > { %2560 = vrcp.f32 %v883_v35 }
 0x4d3   : > { %v796_v36 = vpop.permute.xlu0 %795 }
 0x4d4   : > { %799 = vst.msk [vmem:[#allocation3 + $0x8] sm:$0xff] %vm782_vm1, %v796_v36 }
 0x4d5   : > { %v790_v37 = vpop.permute.xlu1 %789 }
 0x4d6   : > { %793 = vst.msk [vmem:[#allocation2 + $0x8] sm:$0xff] %vm782_vm1, %v790_v37 }
 0x4da   : > { %v2559_v38 = vpop.eup %2558 }
 0x4db   : > { %v886_v40 = vmul.f32 %v2559_v38, %v2555_v29  ;;  %v936_v42 = vld [vmem:[#allocation3 + $0x8] sm:$0xff] }
 0x4dc   : > { %v2561_v39 = vpop.eup %2560  ;;  %v942_v44 = vsel %vm782_vm1, %v936_v42, 0  ;;  %v2472_v42 = vld [vmem:[#allocation12 + $0x4] ss:$16 sps:$4 sm:$0xff]  }
 0x4dd   : > { %v887_v41 = vmul.f32 %v2561_v39, %v2557_v32  ;;  %v935_v45 = vld [vmem:[#allocation2 + $0x8] sm:$0xff] }
 0x4df   : > { %v888_v43 = vpack.c.bf16 %v887_v41, %v886_v40 }
 0x4e1   : > { %2294 = vmatmul.mubr.msk.bf16.vlgmr.msra.gmra.mrb[8].mxu1 %vm865_vm4, %v888_v43  ;;  %v2473_v43 = vld [vmem:[#allocation12 + $0x8] ss:$16 sps:$4 sm:$0xff]  }
 0x4e2   : > { %2298 = vmatpush3.bf16.xpose.msra.mxu1 %v942_v44  ;;  %2299 = vmatprep.mubr.msk.bf16.mxu1 %vm2839_vm0, %v2837_v4  ;;  %v2475_v44 = vld [vmem:[#allocation12 + $0xc] ss:$16 sps:$4 sm:$0xff]  }
 0x4e3   : > { %2303 = vmatprep.subr.bf16.mxu1 %v2837_v4 }
 0x4e9   : > { %2300 = vmatmul.mubr.msk.bf16.vlgmr.msra.gmra.mrb[12].mxu1 %vm782_vm1, %v935_v45  ;;  %v2478_v45 = vld [vmem:[#allocation12 + $0x24] ss:$16 sps:$4 sm:$0xff]  }
 0x4ea   : > { %2305 = vmatprep.mubr.msk.bf16.mxu1 %vm2839_vm0, %v2837_v4 }
 0x5b4   : > { %v926_v46 = vpop.f32.mrb[8].mxu1 }
 0x5b5   : > { %v2295_v47 = vpop.f32.mrb[9].mxu1 }
 0x5b6   : > { %v929_v48 = vpop.f32.mrb[10].mxu1  ;;  %v2479_v47 = vld [vmem:[#allocation12 + $0x28] ss:$16 sps:$4 sm:$0xff]  }
 0x5b7   : > { %v933_v49 = vpack.c.bf16 %v929_v48, %v926_v46  ;;  %v2296_v50 = vpop.f32.mrb[11].mxu1  ;;  %v2481_v46 = vld [vmem:[#allocation12 + $0x2c] ss:$16 sps:$4 sm:$0xff]  }
 0x5b9   : > { %934 = vst.msk [vmem:[#allocation5] sm:$0xff] %vm782_vm1, %v933_v49 }
 0x5bc   : > { %v978_v51 = vpop.f32.mrb[12].mxu1 }
 0x5bd   : > { %v979_v52 = vadd.f32 %v978_v51, %v813_v13  ;;  %v2301_v53 = vpop.f32.mrb[13].mxu1 }
 0x5be   : > { %v981_v54 = vpop.f32.mrb[14].mxu1 }
 0x5bf   : > { %v982_v55 = vadd.f32 %v981_v54, %v814_v15  ;;  %v2302_v56 = vpop.f32.mrb[15].mxu1  ;;  %v985_v57 = vsel %vm865_vm4, %v979_v52, -inf }
 0x5c0   : > { %986 = vmax.xlane.f32.xlu1 %v985_v57  ;;  %v2487_v56 = vld [vmem:[#allocation12 + $0x4c] ss:$16 sps:$4 sm:$0xff]   ;;  %v2482_v57 = vld [vmem:[#allocation12 + $0x40] ss:$16 sps:$4 sm:$0xff]  }
 0x5c1   : > { %v988_v58 = vsel %vm865_vm4, %v982_v55, -inf }
 0x5c2   : > { %989 = vmax.xlane.f32.xlu0 %v988_v58  ;;  %v2485_v58 = vld [vmem:[#allocation12 + $0x48] ss:$16 sps:$4 sm:$0xff]  }
 0x64d   : > { %v987_v59 = vpop.xlane.xlu1 %986 }
 0x64e   : > { %v991_v60 = vsub.f32 %v979_v52, %v987_v59  ;;  %v2490_v59 = vld [vmem:[#allocation12 + $0x64] ss:$16 sps:$4 sm:$0xff]  }
 0x64f   : > { %v990_v62 = vpop.xlane.xlu0 %989 }
 0x650   : > { %v993_v63 = vmul.f32 1.442695, %v991_v60  ;;  %v992_v2 = vsub.f32 %v982_v55, %v990_v62  ;;  %v2484_v55 = vld [vmem:[#allocation12 + $0x44] ss:$16 sps:$4 sm:$0xff]   ;;  %v2493_v60 = vld [vmem:[#allocation12 + $0x6c] ss:$16 sps:$4 sm:$0xff]  }
 0x651   : > { %v2488_v62 = vld [vmem:[#allocation12 + $0x60] ss:$16 sps:$4 sm:$0xff]  }
 0x652   : > { %2562 = vpow2.f32 %v993_v63  ;;  %v995_v3 = vmul.f32 1.442695, %v992_v2  ;;  %v2491_v63 = vld [vmem:[#allocation12 + $0x68] ss:$16 sps:$4 sm:$0xff]   ;;  %v2496_v2 = vld [vmem:[#allocation12 + $0x84] ss:$16 sps:$4 sm:$0xff]  }
 0x654   : > { %2564 = vpow2.f32 %v995_v3  ;;  %v2499_v3 = vld [vmem:[#allocation12 + $0x8c] ss:$16 sps:$4 sm:$0xff]  }
 0x65c   : > { %v2563_v5 = vpop.eup %2562 }
 0x65d   : > { %v997_v6 = vsel %vm865_vm4, %v2563_v5, 0.0 }
 0x65e   : > { %v2565_v7 = vpop.eup %2564  ;;  %998 = vadd.xlane.f32.xlu0 %v997_v6  ;;  %v2497_v6 = vld [vmem:[#allocation12 + $0x88] ss:$16 sps:$4 sm:$0xff]  }
 0x65f   : > { %v1000_v8 = vsel %vm865_vm4, %v2565_v7, 0.0 }
 0x660   : > { %1001 = vadd.xlane.f32.xlu1 %v1000_v8  ;;  %v2505_v8 = vld [vmem:[#allocation12 + $0xac] ss:$16 sps:$4 sm:$0xff]  }
 0x674   : > { %801 = vrot.lane.b32.xlu0 %v3176_v61, %s2840_s28  ;;  %v2463_v61 = vld [vmem:[#allocation11 + $0x8] sm:$0xff]  }
 0x675   : > { %2312 = vmatpush3.bf16.msra.mxu0 %v2463_v61 }
 0x676   : > { %2313 = vmatprep.subr.bf16.mxu0 %v2837_v4 }
 0x679   : > { %2314 = vmatpush3.bf16.msra.mxu0 %v2464_v20 }
 0x67a   : > { %2315 = vmatprep.subr.bf16.mxu0 %v2837_v4 }
 0x67d   : > { %2316 = vmatpush3.bf16.msra.mxu0 %v2465_v21 }
 0x67e   : > { %2317 = vmatprep.subr.bf16.mxu0 %v2837_v4 }
 0x681   : > { %2318 = vmatpush3.bf16.msra.mxu0 %v2466_v22 }
 0x682   : > { %2319 = vmatprep.subr.bf16.mxu0 %v2837_v4 }
 0x685   : > { %2320 = vmatpush3.bf16.msra.mxu0 %v2467_v23 }
 0x686   : > { %2321 = vmatprep.subr.bf16.mxu0 %v2837_v4 }
 0x689   : > { %2322 = vmatpush3.bf16.msra.mxu0 %v2468_v24 }
 0x68a   : > { %2323 = vmatprep.subr.bf16.mxu0 %v2837_v4 }
 0x68d   : > { %2324 = vmatpush3.bf16.msra.mxu0 %v2469_v25 }
 0x68e   : > { %1472 = vmatprep.subr.bf16.mxu0 %v2475_v44  ;;  %v2525_v44 = vld [vmem:[#allocation14 + $0x88] sm:$0xff]  }
 0x6eb   : > { %v999_v9 = vpop.xlane.xlu0 %998 }
 0x6ec   : > { %2566 = vrcp.f32 %v999_v9  ;;  %v2500_v9 = vld [vmem:[#allocation12 + $0xa0] ss:$16 sps:$4 sm:$0xff]  }
 0x6ed   : > { %v1002_v11 = vpop.xlane.xlu1 %1001 }
 0x6ee   : > { %2568 = vrcp.f32 %v1002_v11  ;;  %v2503_v11 = vld [vmem:[#allocation12 + $0xa8] ss:$16 sps:$4 sm:$0xff]  }
 0x6ef   : > { %v802_v12 = vpop.permute.xlu0 %801 }
 0x6f0   : > { %805 = vst.msk [vmem:[#allocation4 + $0x8] sm:$0xff] %vm782_vm1, %v802_v12  ;;  %v2508_v12 = vld [vmem:[#allocation12 + $0xc4] ss:$16 sps:$4 sm:$0xff]  }
 0x6f6   : > { %v2567_v13 = vpop.eup %2566 }
 0x6f7   : > { %v937_v14 = vld [vmem:[#allocation4 + $0x8] sm:$0xff]  ;;  %v1005_v16 = vmul.f32 %v2567_v13, %v2563_v5  ;;  %v2511_v13 = vld [vmem:[#allocation12 + $0xcc] ss:$16 sps:$4 sm:$0xff]  }
 0x6f8   : > { %v2569_v15 = vpop.eup %2568  ;;  %2304 = vmatpush3.bf16.msra.mxu1 %v937_v14  ;;  %v2494_v5 = vld [vmem:[#allocation12 + $0x80] ss:$16 sps:$4 sm:$0xff]  }
 0x6f9   : > { %v1006_v17 = vmul.f32 %v2569_v15, %v2565_v7  ;;  %1429 = vmatprep.subr.bf16.mxu1 %v2472_v42  ;;  %v2502_v7 = vld [vmem:[#allocation12 + $0xa4] ss:$16 sps:$4 sm:$0xff]   ;;  %v2506_v14 = vld [vmem:[#allocation12 + $0xc0] ss:$16 sps:$4 sm:$0xff]   ;;  %v2509_v15 = vld [vmem:[#allocation12 + $0xc8] ss:$16 sps:$4 sm:$0xff]  }
 0x6fa   : > { %v2523_v42 = vld [vmem:[#allocation14 + $0xc8] sm:$0xff]  }
 0x6fb   : > { %v1007_v18 = vpack.c.bf16 %v1006_v17, %v1005_v16  ;;  %v2514_v16 = vld [vmem:[#allocation12 + $0xe4] ss:$16 sps:$4 sm:$0xff]   ;;  %v2517_v17 = vld [vmem:[#allocation12 + $0xec] ss:$16 sps:$4 sm:$0xff]  }
 0x6fd   : > { %2306 = vmatmul.mubr.msk.bf16.vlgmr.msra.gmra.mrb[16].mxu1 %vm865_vm4, %v1007_v18  ;;  %v2512_v18 = vld [vmem:[#allocation12 + $0xe0] ss:$16 sps:$4 sm:$0xff]  }
 0x6fe   : > { %1461 = vmatprep.mubr.bf16.mxu1 %v2838_v30 }
 0x7d0   : > { %v1045_v26 = vpop.f32.mrb[16].mxu1 }
 0x7d1   : > { %v2307_v27 = vpop.f32.mrb[17].mxu1 }
 0x7d2   : > { %v1048_v28 = vpop.f32.mrb[18].mxu1 }
 0x7d3   : > { %v1052_v29 = vpack.c.bf16 %v1048_v28, %v1045_v26  ;;  %v2308_v31 = vpop.f32.mrb[19].mxu1  ;;  %v2113_v26 = vld [vmem:[%s3344_s6] ss:$0 sm:$0xff] }
 0x7d5   : > { %1054 = vrot.lane.b32.xlu1 %v1052_v29, %s2840_s28  ;;  %s489_s28 = scalar_lea.vmem [#allocation15], %s2068_s11  ;;  %s1933_s11 = scalar_lea.sflag [#allocation8], %s3117_s15 }
 0x7d6   : > { %s1946_s3 = sshll.u32 %s489_s28, 4  ;;  %s3288_s3 = int_to_ptr.vmem [resolvable:$true] %s1946_s3 }
 0x7d7   : > { %s2748_s9 = scalar_lea.vmem %s3288_s3, 256  ;;  %p2755_p12 = scmp.lt.s32.totalorder %s3288_s3, %s2753_s26 }
 0x7d8   : > { %p2749_p3 = scmp.ne.s32.totalorder %s3288_s3, %s2748_s9 }
 0x7da   : > { %p2750_p5 = pnand %p2749_p3, %p3065_p10 }
 0x7dc   : > { %p2751_p7 = pneg %p2750_p5 }
 0x847   : > { %v1055_v32 = vpop.permute.xlu1 %1054 }
 0x848   : > { %1058 = vst.msk [vmem:[#allocation5] sm:$0xff] %vm1057_vm5, %v1055_v32  ;;  %v2114_v32 = vld [vmem:[%s3345_s7] ss:$0 sm:$0xff] }
 0x84f   : > { %v1059_v33 = vld [vmem:[#allocation5] sm:$0xff] }
 0x850   : > { %2326 = vmatmul.mubr.bf16.vlgmr.msra.gmra.mrb[4].mxu0 %v1059_v33 }
 0x851   : > { %1504 = vmatprep.mubr.bf16.mxu0 %v2838_v30  ;;  %v2470_v30 = vld [vmem:[#allocation12] ss:$16 sps:$4 sm:$0xff]   ;;  %1473 = vmatpush1.bf16.msra.mxu0 %v2473_v43  ;;  %v2524_v43 = vld [vmem:[#allocation14 + $0x8] sm:$0xff]  }
 0x852   : > { %1430 = vmatpush1.bf16.msra.mxu1 %v2470_v30  ;;  %1474 = vmatprep.subr.bf16.mxu0 %v2481_v46  ;;  %v2522_v30 = vld [vmem:[#allocation14 + $0x48] sm:$0xff]   ;;  %v2527_v46 = vld [vmem:[#allocation14 + $0xd0] sm:$0xff]  }
 0x853   : > { %1431 = vmatprep.subr.bf16.mxu1 %v2478_v45  ;;  %v2526_v45 = vld [vmem:[#allocation14 + $0x50] sm:$0xff]  }
 0x855   : > { %1475 = vmatpush1.bf16.msra.mxu0 %v2479_v47  ;;  %v2529_v47 = vld [vmem:[#allocation14 + $0x90] sm:$0xff]  }
 0x856   : > { %1476 = vmatprep.subr.bf16.mxu0 %v2487_v56  ;;  %v2539_v56 = vld [vmem:[#allocation14 + $0xe8] sm:$0xff]  }
 0x859   : > { %1477 = vmatpush1.bf16.msra.mxu0 %v2485_v58  ;;  %v2541_v58 = vld [vmem:[#allocation14 + $0xa8] sm:$0xff]  }
 0x85a   : > { %1478 = vmatprep.subr.bf16.mxu0 %v2493_v60  ;;  %v2543_v60 = vld [vmem:[#allocation14 + $0xf0] sm:$0xff]  }
 0x85d   : > { %1479 = vmatpush1.bf16.msra.mxu0 %v2491_v63  ;;  %v2545_v63 = vld [vmem:[#allocation14 + $0xb0] sm:$0xff]  }
 0x85e   : > { %1480 = vmatprep.subr.bf16.mxu0 %v2499_v3  ;;  %v2547_v3 = vld [vmem:[#allocation14 + $0xf8] sm:$0xff]  }
 0x861   : > { %1481 = vmatpush1.bf16.msra.mxu0 %v2497_v6  ;;  %v2549_v6 = vld [vmem:[#allocation14 + $0xb8] sm:$0xff]  }
 0x862   : > { %1482 = vmatprep.subr.bf16.mxu0 %v2505_v8  ;;  %v1259_v8 = vsub.s32 2, %v3188_v10 }
 0x865   : > { %1483 = vmatpush1.bf16.msra.mxu0 %v2503_v11  ;;  %v1255_v11 = vsub.s32 1, %v3188_v10 }
 0x866   : > { %1484 = vmatprep.subr.bf16.mxu0 %v2511_v13 }
 0x869   : > { %1485 = vmatpush1.bf16.msra.mxu0 %v2509_v15 }
 0x86a   : > { %1486 = vmatprep.subr.bf16.mxu0 %v2517_v17 }
 0x86d   : > { %1487 = vmatpush1.bf16.msra.mxu0 %v2515_v19 }
 0x923   : > { %v1165_v4 = vpop.f32.mrb[4].mxu0 }
 0x924   : > { %v1166_v35 = vadd.f32 %v2104_v34, %v1165_v4  ;;  %v2327_v36 = vpop.f32.mrb[5].mxu0 }
 0x925   : > { %v1168_v37 = vpop.f32.mrb[6].mxu0  ;;  %v2518_v36 = vld [vmem:[#allocation14 + $0x40] sm:$0xff]  }
 0x926   : > { %v3233_v38 = vadd.f32 %v1166_v35, %v3135_v0  ;;  %v1169_v39 = vadd.f32 %v2104_v34, %v1168_v37  ;;  %v2328_v40 = vpop.f32.mrb[7].mxu0  ;;  %v2476_v0 = vld [vmem:[#allocation12 + $0x20] ss:$16 sps:$4 sm:$0xff]  }
 0x927   : > { %1432 = vmatpush1.bf16.msra.mxu1 %v2476_v0  ;;  %v2519_v37 = vld [vmem:[#allocation14 + $0xc0] sm:$0xff]   ;;  %v2528_v0 = vld [vmem:[#allocation14 + $0x10] sm:$0xff]  }
 0x928   : > { %v3236_v41 = vadd.f32 %v1169_v39, %v3137_v1  ;;  %1174 = vadd.xlane.f32.xlu1 %v3233_v38  ;;  %1433 = vmatprep.subr.bf16.mxu1 %v2484_v55  ;;  %v2520_v39 = vld [vmem:[#allocation14] sm:$0xff]   ;;  %v2538_v55 = vld [vmem:[#allocation14 + $0x68] sm:$0xff]  }
 0x929   : > { %v2521_v40 = vld [vmem:[#allocation14 + $0x80] sm:$0xff]   ;;  %2243 = vmatprep.subr.bf16.mxu0 %v2519_v37 }
 0x92a   : > { %1176 = vadd.xlane.f32.xlu0 %v3236_v41 }
 0x92b   : > { %1434 = vmatpush1.bf16.msra.mxu1 %v2482_v57  ;;  %v2540_v57 = vld [vmem:[#allocation14 + $0x28] sm:$0xff]  }
 0x92c   : > { %1435 = vmatprep.subr.bf16.mxu1 %v2490_v59  ;;  %v2542_v59 = vld [vmem:[#allocation14 + $0x70] sm:$0xff]  }
 0x92f   : > { %1436 = vmatpush1.bf16.msra.mxu1 %v2488_v62  ;;  %v2544_v62 = vld [vmem:[#allocation14 + $0x30] sm:$0xff]  }
 0x930   : > { %1437 = vmatprep.subr.bf16.mxu1 %v2496_v2  ;;  %v2546_v2 = vld [vmem:[#allocation14 + $0x78] sm:$0xff]  }
 0x933   : > { %1438 = vmatpush1.bf16.msra.mxu1 %v2494_v5  ;;  %v2548_v5 = vld [vmem:[#allocation14 + $0x38] sm:$0xff]  }
 0x934   : > { %1439 = vmatprep.subr.bf16.mxu1 %v2502_v7  ;;  %v1251_v7 = vsub.s32 0, %v3188_v10 }
 0x937   : > { %1440 = vmatpush1.bf16.msra.mxu1 %v2500_v9  ;;  %v1247_v9 = vld [vmem:[%s3378_s27] sm:$0xf]  ;;  %s2754_s27 = scalar_lea.vmem %s2753_s26, 512 }
 0x938   : > { %1441 = vmatprep.subr.bf16.mxu1 %v2508_v12  ;;  %v1263_v12 = vsub.s32 3, %v3188_v10  ;;  %v1252_v13 = vrot.slane %v1247_v9, %v1251_v7  ;;  %v1256_v15 = vrot.slane %v1247_v9, %v1255_v11  ;;  %p2756_p2 = scmp.lt.s32.totalorder %s2754_s27, %s2748_s9 }
 0x93a   : > { %p2757_p1 = por %p2756_p2, %p2755_p12 }
 0x93b   : > { %1442 = vmatpush1.bf16.msra.mxu1 %v2506_v14  ;;  %v1260_v14 = vrot.slane %v1247_v9, %v1259_v8 }
 0x93c   : > { %1443 = vmatprep.subr.bf16.mxu1 %v2514_v16  ;;  %v1264_v16 = vrot.slane %v1247_v9, %v1263_v12  ;;  %p2758_p13 = pnand %p2757_p1, %p2751_p7 }
 0x93f   : > { %1444 = vmatpush1.bf16.msra.mxu1 %v2512_v18 }
 0x940   : > { %2221 = vmatprep.subr.bf16.mxu1 %v2518_v36 }
 0x9b5   : > { %v1175_v1 = vpop.xlane.xlu1 %1174 }
 0x9b6   : > { %v1178_v48 = vmul.f32 0.0078125, %v1175_v1  ;;  %v2530_v1 = vld [vmem:[#allocation14 + $0x58] sm:$0xff]  }
 0x9b7   : > { %v1177_v49 = vpop.xlane.xlu0 %1176 }
 0x9b8   : > { %v3241_v50 = vsub.f32 %v3233_v38, %v1178_v48  ;;  %v1179_v51 = vmul.f32 0.0078125, %v1177_v49  ;;  %v2531_v48 = vld [vmem:[#allocation14 + $0xd8] sm:$0xff]  }
 0x9b9   : > { %v2532_v49 = vld [vmem:[#allocation14 + $0x18] sm:$0xff]  }
 0x9ba   : > { %v3244_v52 = vsub.f32 %v3236_v41, %v1179_v51  ;;  %v1182_v53 = vmul.f32 %v3241_v50, %v3241_v50  ;;  %v2534_v51 = vld [vmem:[#allocation14 + $0x60] sm:$0xff]  }
 0x9bc   : > { %1184 = vadd.xlane.f32.xlu0 %v1182_v53  ;;  %v1183_v54 = vmul.f32 %v3244_v52, %v3244_v52  ;;  %v2536_v53 = vld [vmem:[#allocation14 + $0x20] sm:$0xff]  }
 0x9be   : > { %1186 = vadd.xlane.f32.xlu1 %v1183_v54  ;;  %v2537_v54 = vld [vmem:[#allocation14 + $0xa0] sm:$0xff]  }
 0xa49   : > { %v1185_v61 = vpop.xlane.xlu0 %1184 }
 0xa4a   : > { %v1188_v20 = vmul.f32 0.0078125, %v1185_v61 }
 0xa4b   : > { %v1187_v21 = vpop.xlane.xlu1 %1186 }
 0xa4c   : > { %v1190_v22 = vadd.f32 1e-05, %v1188_v20  ;;  %v1189_v23 = vmul.f32 0.0078125, %v1187_v21 }
 0xa4e   : > { %2570 = vrsqrt.f32 %v1190_v22  ;;  %v1191_v24 = vadd.f32 1e-05, %v1189_v23 }
 0xa50   : > { %2572 = vrsqrt.f32 %v1191_v24 }
 0xa58   : > { %v2571_v25 = vpop.eup %2570 }
 0xa59   : > { %v1194_v27 = vmul.f32 %v2571_v25, %v3241_v50  ;;  %v2533_v50 = vld [vmem:[#allocation14 + $0x98] sm:$0xff]  }
 0xa5a   : > { %v2573_v28 = vpop.eup %2572 }
 0xa5b   : > { %v1195_v29 = vmul.f32 %v2573_v28, %v3244_v52  ;;  %v1203_v31 = vmul.f32 %v2113_v26, %v1194_v27  ;;  %v2535_v52 = vld [vmem:[#allocation14 + $0xe0] sm:$0xff]  }
 0xa5d   : > { %v1204_v33 = vmul.f32 %v2113_v26, %v1195_v29  ;;  %v1212_v34 = vadd.f32 %v2114_v32, %v1203_v31 }
 0xa5f   : > { %v1213_v4 = vadd.f32 %v2114_v32, %v1204_v33 }
 0xa61   : > { %v1214_v35 = vpack.c.bf16 %v1213_v4, %v1212_v34 }
 0xa63   : > { %1462 = vmatmul.mubr.bf16.vlgmr.msra.gmra.mrb[20].mxu1 %v1214_v35  ;;  %1505 = vmatmul.mubr.bf16.vlgmr.msra.gmra.mrb[8].mxu0 %v1214_v35 }
 0xa64   : > { %2222 = vmatpush3.bf16.msra.mxu1 %v2520_v39  ;;  %2244 = vmatpush3.bf16.msra.mxu0 %v2521_v40 }
 0xa65   : > { %2223 = vmatprep.subr.bf16.mxu1 %v2522_v30  ;;  %2245 = vmatprep.subr.bf16.mxu0 %v2523_v42 }
 0xa68   : > { %2224 = vmatpush3.bf16.msra.mxu1 %v2524_v43  ;;  %2246 = vmatpush3.bf16.msra.mxu0 %v2525_v44 }
 0xa69   : > { %2225 = vmatprep.subr.bf16.mxu1 %v2526_v45  ;;  %2247 = vmatprep.subr.bf16.mxu0 %v2527_v46 }
 0xa6c   : > { %2226 = vmatpush3.bf16.msra.mxu1 %v2528_v0  ;;  %2248 = vmatpush3.bf16.msra.mxu0 %v2529_v47 }
 0xa6d   : > { %2227 = vmatprep.subr.bf16.mxu1 %v2530_v1  ;;  %2249 = vmatprep.subr.bf16.mxu0 %v2531_v48 }
 0xa70   : > { %2228 = vmatpush3.bf16.msra.mxu1 %v2532_v49  ;;  %2250 = vmatpush3.bf16.msra.mxu0 %v2533_v50 }
 0xa71   : > { %2229 = vmatprep.subr.bf16.mxu1 %v2534_v51  ;;  %2251 = vmatprep.subr.bf16.mxu0 %v2535_v52 }
 0xa74   : > { %2230 = vmatpush3.bf16.msra.mxu1 %v2536_v53  ;;  %2252 = vmatpush3.bf16.msra.mxu0 %v2537_v54 }
 0xa75   : > { %2231 = vmatprep.subr.bf16.mxu1 %v2538_v55  ;;  %2253 = vmatprep.subr.bf16.mxu0 %v2539_v56 }
 0xa78   : > { %2232 = vmatpush3.bf16.msra.mxu1 %v2540_v57  ;;  %2254 = vmatpush3.bf16.msra.mxu0 %v2541_v58 }
 0xa79   : > { %2233 = vmatprep.subr.bf16.mxu1 %v2542_v59  ;;  %2255 = vmatprep.subr.bf16.mxu0 %v2543_v60 }
 0xa7c   : > { %2234 = vmatpush3.bf16.msra.mxu1 %v2544_v62  ;;  %2256 = vmatpush3.bf16.msra.mxu0 %v2545_v63 }
 0xa7d   : > { %2235 = vmatprep.subr.bf16.mxu1 %v2546_v2  ;;  %2257 = vmatprep.subr.bf16.mxu0 %v2547_v3 }
 0xa80   : > { %2236 = vmatpush3.bf16.msra.mxu1 %v2548_v5  ;;  %2258 = vmatpush3.bf16.msra.mxu0 %v2549_v6 }
 0xb36   : > { %v1463_v17 = vpop.f32.mrb[20].mxu1  ;;  %v1506_v18 = vpop.f32.mrb[8].mxu0 }
 0xb37   : > { %v3265_v19 = vadd.f32 %v1463_v17, %v1252_v13  ;;  %v3267_v61 = vadd.f32 %v1506_v18, %v1260_v14  ;;  %v1465_v20 = vpop.f32.mrb[21].mxu1  ;;  %v1508_v21 = vpop.f32.mrb[9].mxu0 }
 0xb38   : > { %v3269_v22 = vadd.f32 %v1465_v20, %v1256_v15  ;;  %v3271_v23 = vadd.f32 %v1508_v21, %v1264_v16  ;;  %v1467_v24 = vpop.f32.mrb[22].mxu1  ;;  %v1510_v25 = vpop.f32.mrb[10].mxu0 }
 0xb39   : > { %v2147_v10 = vmul.f32 -1.702, %v3265_v19  ;;  %v2149_v26 = vmul.f32 -1.702, %v3267_v61  ;;  %v1468_v27 = vadd.f32 %v1467_v24, %v1252_v13  ;;  %v1511_v28 = vadd.f32 %v1510_v25, %v1260_v14  ;;  %v1469_v29 = vpop.f32.mrb[23].mxu1  ;;  %v1512_v31 = vpop.f32.mrb[11].mxu0 }
 0xb3a   : > { %v2148_v32 = vmul.f32 -1.702, %v3269_v22  ;;  %v2150_v33 = vmul.f32 -1.702, %v3271_v23  ;;  %v1470_v34 = vadd.f32 %v1469_v29, %v1256_v15  ;;  %v1513_v4 = vadd.f32 %v1512_v31, %v1264_v16 }
 0xb3b   : > { %v1531_v35 = vmul.f32 1.442695, %v2147_v10  ;;  %v1535_v36 = vmul.f32 1.442695, %v2149_v26  ;;  %v2151_v37 = vmul.f32 -1.702, %v1468_v27 }
 0xb3c   : > { %v1533_v39 = vmul.f32 1.442695, %v2148_v32  ;;  %v1537_v40 = vmul.f32 1.442695, %v2150_v33  ;;  %v2153_v30 = vmul.f32 -1.702, %v1511_v28 }
 0xb3d   : > { %2574 = vpow2.f32 %v1531_v35  ;;  %v1539_v42 = vmul.f32 1.442695, %v2151_v37  ;;  %v2152_v43 = vmul.f32 -1.702, %v1470_v34  ;;  %v2154_v44 = vmul.f32 -1.702, %v1513_v4 }
 0xb3e   : > { %2576 = vpow2.f32 %v1535_v36  ;;  %v1543_v45 = vmul.f32 1.442695, %v2153_v30 }
 0xb3f   : > { %2578 = vpow2.f32 %v1533_v39  ;;  %v1541_v46 = vmul.f32 1.442695, %v2152_v43  ;;  %v1545_v0 = vmul.f32 1.442695, %v2154_v44 }
 0xb40   : > { %2580 = vpow2.f32 %v1537_v40 }
 0xb41   : > { %2582 = vpow2.f32 %v1539_v42 }
 0xb42   : > { %2584 = vpow2.f32 %v1543_v45 }
 0xb43   : > { %2586 = vpow2.f32 %v1541_v46 }
 0xb44   : > { %2588 = vpow2.f32 %v1545_v0 }
 0xb47   : > { %v2575_v47 = vpop.eup %2574 }
 0xb48   : > { %v2577_v1 = vpop.eup %2576  ;;  %v1547_v48 = vadd.f32 1.0, %v2575_v47 }
 0xb49   : > { %v2579_v49 = vpop.eup %2578  ;;  %v1549_v50 = vadd.f32 1.0, %v2577_v1 }
 0xb4a   : > { %v2581_v51 = vpop.eup %2580  ;;  %2590 = vrcp.f32 %v1547_v48  ;;  %v1548_v52 = vadd.f32 1.0, %v2579_v49 }
 0xb4b   : > { %v2583_v53 = vpop.eup %2582  ;;  %2592 = vrcp.f32 %v1549_v50  ;;  %v1550_v54 = vadd.f32 1.0, %v2581_v51 }
 0xb4c   : > { %v2585_v55 = vpop.eup %2584  ;;  %2594 = vrcp.f32 %v1548_v52  ;;  %v1551_v56 = vadd.f32 1.0, %v2583_v53 }
 0xb4d   : > { %v2587_v57 = vpop.eup %2586  ;;  %2596 = vrcp.f32 %v1550_v54  ;;  %v1553_v58 = vadd.f32 1.0, %v2585_v55 }
 0xb4e   : > { %v2589_v59 = vpop.eup %2588  ;;  %2598 = vrcp.f32 %v1551_v56  ;;  %v1552_v60 = vadd.f32 1.0, %v2587_v57 }
 0xb4f   : > { %2600 = vrcp.f32 %v1553_v58  ;;  %v1554_v62 = vadd.f32 1.0, %v2589_v59 }
 0xb50   : > { %2602 = vrcp.f32 %v1552_v60 }
 0xb51   : > { %2604 = vrcp.f32 %v1554_v62 }
 0xb54   : > { %v2591_v63 = vpop.eup %2590 }
 0xb55   : > { %v2593_v2 = vpop.eup %2592  ;;  %v1571_v8 = vmul.f32 %v2591_v63, %v3265_v19 }
 0xb56   : > { %v2595_v3 = vpop.eup %2594  ;;  %v1573_v12 = vmul.f32 %v2593_v2, %v3267_v61  ;;  %v2155_v61 = vld [vmem:[%s3379_s16] ss:$0 sm:$0xff] }
 0xb57   : > { %v2597_v5 = vpop.eup %2596  ;;  %v1572_v15 = vmul.f32 %v2595_v3, %v3269_v22 }
 0xb58   : > { %v2599_v6 = vpop.eup %2598  ;;  %v1574_v18 = vmul.f32 %v2597_v5, %v3271_v23 }
 0xb59   : > { %v2601_v7 = vpop.eup %2600  ;;  %v1575_v9 = vmul.f32 %v2599_v6, %v1468_v27 }
 0xb5a   : > { %v2603_v11 = vpop.eup %2602  ;;  %v1577_v13 = vmul.f32 %v2601_v7, %v1511_v28 }
 0xb5b   : > { %v2605_v14 = vpop.eup %2604  ;;  %v1579_v16 = vpack.c.bf16 %v1575_v9, %v1571_v8  ;;  %v1576_v17 = vmul.f32 %v2603_v11, %v1470_v34 }
 0xb5c   : > { %v1581_v20 = vpack.c.bf16 %v1577_v13, %v1573_v12  ;;  %v1578_v21 = vmul.f32 %v2605_v14, %v1513_v4 }
 0xb5d   : > { %v1580_v24 = vpack.c.bf16 %v1576_v17, %v1572_v15 }
 0xb5e   : > { %v1582_v25 = vpack.c.bf16 %v1578_v21, %v1574_v18 }
 0xb5f   : > { %1878 = vmatprep.mubr.bf16.mxu1 %v1580_v24 }
 0xb60   : > { %1919 = vmatprep.mubr.bf16.mxu0 %v1582_v25  ;;  %1879 = vmatmul.mubr.bf16.vlgmr.msra.gmra.mrb[24].mxu1 %v1579_v16 }
 0xb61   : > { %1920 = vmatmul.mubr.bf16.vlgmr.msra.gmra.mrb[12].mxu0 %v1581_v20 }
 0xc33   : > { %v2237_v19 = vpop.f32.mrb[24].mxu1 }
 0xc34   : > { %v2259_v10 = vpop.f32.mrb[12].mxu0  ;;  %v2238_v22 = vpop.f32.mrb[25].mxu1 }
 0xc35   : > { %v2239_v26 = vadd.f32 %v2238_v22, %v2237_v19  ;;  %v2260_v27 = vpop.f32.mrb[13].mxu0  ;;  %v2240_v23 = vpop.f32.mrb[26].mxu1 }
 0xc36   : > { %v2261_v28 = vadd.f32 %v2260_v27, %v2259_v10  ;;  %v2262_v29 = vpop.f32.mrb[14].mxu0  ;;  %v2241_v31 = vpop.f32.mrb[27].mxu1 }
 0xc37   : > { %v1881_v32 = vadd.f32 %v2239_v26, %v2155_v61  ;;  %v2242_v33 = vadd.f32 %v2241_v31, %v2240_v23  ;;  %v2263_v34 = vpop.f32.mrb[15].mxu0 }
 0xc38   : > { %v2264_v4 = vadd.f32 %v2263_v34, %v2262_v29 }
 0xc39   : > { %v1922_v35 = vadd.f32 %v2261_v28, %v1881_v32  ;;  %v1884_v36 = vadd.f32 %v2242_v33, %v2155_v61 }
 0xc3b   : > { %v1928_v37 = vadd.f32 %v1922_v35, %v3233_v38  ;;  %v1925_v39 = vadd.f32 %v2264_v4, %v1884_v36 }
 0xc3d   : > { %1930 = vst [vmem:[%s489_s28] sm:$0xff] %v1928_v37  ;;  %v1929_v40 = vadd.f32 %v1925_v39, %v3236_v41 }
 0xc3f   : > { %1931 = vst [vmem:[%s489_s28 + $0x8] sm:$0xff] %v1929_v40 }
 0xc40   : > { %2761 = shalt.err (!%p2758_p13)
}
 0xc41   : > { %s2762_s29 = scalar_lea.hbm %s3293_s14, 256  ;;  %s2766_s28 = scalar_lea.hbm %s3380_s12, 512 }
 0xc42   : > { %p2763_p9 = scmp.ne.s32.totalorder %s3293_s14, %s2762_s29  ;;  %p2767_p4 = scmp.lt.u32.totalorder %s3293_s14, %s3380_s12 }
 0xc43   : > { %p2768_p8 = scmp.lt.u32.totalorder %s2766_s28, %s2762_s29  ;;  %p2770_p3 = scmp.lt.u32.totalorder %s2762_s29, %s3293_s14 }
 0xc44   : > { %p2764_p0 = pnand %p2763_p9, %p3065_p10 }
 0xc45   : > { %p2769_p6 = por %p2768_p8, %p2767_p4 }
 0xc46   : > { %p2765_p11 = pneg %p2764_p0 }
 0xc47   : > { %p2771_p5 = por %p2770_p3, %p2769_p6 }
 0xc49   : > { %p2772_p7 = pnand %p2771_p5, %p2765_p11 }
 0xc4b   : > { %2775 = shalt.err (!%p2772_p7)
}
 0xc4c   : > { %s2842_s21 = smov 128   ;;  %s2843_s9 = smov 8  }
 0xc4d   : > { %2347 = dma.vmem_to_hbm [thread:$0]  (%p3065_p10), %s3288_s3, 256, %s3293_s14, %s1933_s11, %s2842_s21, %s2842_s21, %s2843_s9  }
 0xc4e PF: > { %s3381_s25 = sld [smem:[#allocation20_spill]]  ;;  %s3382_s26 = sld [smem:[#allocation21_spill]] }
 0xc4f   : > { %p3384_p2 = scmp.ge.s32.totalorder %s2822_s24, 2 }
 0xc54   : > { %s1961_s27 = sand.u32 1, %s3381_s25   ;;  %p3383_p12 = scmp.ne.s32.totalorder %s3382_s26, 0 }
 0xc55   : > { %s1962_s29 = scalar_lea.sflag [#allocation8], %s1961_s27 }
 0xc56   : > { %p2367_p1 = pnand %p3384_p2, %p3383_p12 }
 0xc58   : > { %2805 = dma.done.wait (!%p2367_p1), %s1962_s29, 256  }
 0xc59   : > { %2807 = vsyncadd (!%p2367_p1), %s1962_s29, 4294967040  ;;  %p27_p13 = scmp.ge.s32.totalorder %s3055_s30, 4   ;;  %s3385_s21 = smov %s2814_s22 }
 0xc5a   : > { %s3386_s22 = smov %s2818_s23  ;;  %s3387_s23 = smov %s3071_s20 }
 0xc5b   : > { %s3388_s24 = smov %s3055_s30  ;;  %29 = sbr.rel (!%p27_p13) target bundleno = 12 (0xc), region = 132 }
 0xc62   :  { %1967 = vsyncpa [#allocation7], 1 }
 0xc63   :  { %1969 = vsyncpa [#allocation7 + $0x1], 1 }
 0xc64   :  { %1970 = vsyncpa [#allocation10], 1 }
 0xc65   :  { %1971 = vsyncpa [#allocation13], 1 }
 0xc66   :  { %1972 = vsyncpa [#allocation8], 1 }
 0xc67   :  { %1974 = vsyncpa [#allocation8 + $0x1], 1 }

</bundles_post_ra>
